<compile_context>
chip_gen: v6e
topology: v6e:2x2x1
jax: 0.10.0
libtpu: 0.0.40
codegen_flags: <defaults>
</compile_context>

<pallas_src>
import functools
import math

import jax
import jax.numpy as jnp
import numpy as np
from jax import lax
from jax.experimental import pallas as pl
from jax.experimental.pallas import tpu as pltpu

# ---- module hyper-params (shrunk from n_embd=256 / block_size=256 for a small demo) ----
BLOCK_SIZE = 16     # maximum sequence length (module's `block_size`)
N_EMBD = 32         # module's `n_embd`
NUM_HEADS = 4
HEAD_SIZE = 16

REL_LEN = 2 * BLOCK_SIZE - 1                        # 2*block_size - 1 table rows
REL_PAD = ((REL_LEN + 127) // 128) * 128            # lane-dense padded width (=128)
ROLL_SHIFT = REL_PAD - (BLOCK_SIZE - 1)             # base shift for the strided roll


# --------------------------------------------------------- relative shift ---
def _rel_shift(s, T):
    """pos[i, j] = s[i, j - i + BLOCK_SIZE - 1] via one strided XLU roll."""
    return pltpu.roll(s, ROLL_SHIFT, 1, stride=1, stride_axis=0)[:, :T]


def _rel_shift_slices(s, T):
    """Fallback shift via static per-row slices (known-correct, slower)."""
    rows = [s[i:i + 1, BLOCK_SIZE - 1 - i:BLOCK_SIZE - 1 - i + T] for i in range(T)]
    return jnp.concatenate(rows, axis=0)


_ROLL_OK = None


def _roll_shift_is_valid():
    """Trace-time validation of the strided-roll shift direction / stride."""
    global _ROLL_OK
    if _ROLL_OK is not None:
        return _ROLL_OK
    T = 8

    def probe(x_ref, o_ref):
        o_ref[...] = _rel_shift(x_ref[...], T)

    try:
        x = jnp.arange(T * REL_PAD, dtype=jnp.float32).reshape(T, REL_PAD)
        got = pl.pallas_call(
            probe, out_shape=jax.ShapeDtypeStruct((T, T), jnp.float32))(x)
        cols = (jnp.arange(T)[None, :] - jnp.arange(T)[:, None]) + (BLOCK_SIZE - 1)
        want = x[jnp.arange(T)[:, None], cols]
        _ROLL_OK = bool(jnp.all(got == want))
    except Exception:
        _ROLL_OK = False
    return _ROLL_OK


# ------------------------------------------------------------------ kernel --
def _fused_rel_mha_kernel(x_ref, wqkv_ref, relbd_ref, wp_ref, bp_ref, mask_ref,
                          o_ref, *, use_roll):
    """One grid step: B_blk batch elements, all heads, fused QKV + rel-attention
    + output projection.

    x_ref     : (B_blk, T, C)       bf16 input block
    wqkv_ref  : (C, 3*H*hs)         bf16 fused QKV weight; K block pre-scaled by hs**-0.5
    relbd_ref : (H*hs, H*REL_PAD)   bf16 block-diagonal, pre-transposed rel-pos table
    wp_ref    : (H, hs, C)          bf16 output projection weight, split per head
    bp_ref    : (1, C)              f32 output projection bias
    mask_ref  : (T, T)              f32 additive causal mask (0 / -1e30)
    o_ref     : (B_blk, T, C)       f32 output block
    """
    B_blk, T, C = x_ref.shape
    H, hs = NUM_HEADS, HEAD_SIZE
    shift = _rel_shift if use_roll else _rel_shift_slices

    # (B_blk, T, C) -> (B_blk*T, C) is a leading-dim collapse (layout-trivial),
    # so QKV for the whole block is ONE lane-dense MXU matmul; the result is
    # cast to bf16 once (every downstream consumer is a bf16 matmul operand).
    x = x_ref[...].reshape(B_blk * T, C)
    qkv = jnp.dot(x, wqkv_ref[...],
                  preferred_element_type=jnp.float32).astype(jnp.bfloat16)

    # Position scores for ALL heads in one MXU matmul against the block-diagonal
    # rel table; per-head extraction below is a 128-aligned lane slice.
    pos_all = jnp.dot(qkv[:, :H * hs], relbd_ref[...],
                      preferred_element_type=jnp.float32)       # (B_blk*T, H*REL_PAD)

    mask = mask_ref[...]                                        # (T, T)  f32 additive
    bias = bp_ref[...]                                          # (1, C)  f32

    for b in range(B_blk):                      # static unroll (B_blk small)
        r0 = b * T
        acc = None
        for h in range(H):                      # static unroll (H small)
            q = qkv[r0:r0 + T, h * hs:(h + 1) * hs]                     # (T, hs) bf16
            k = qkv[r0:r0 + T, (H + h) * hs:(H + h + 1) * hs]           # pre-scaled
            v = qkv[r0:r0 + T, (2 * H + h) * hs:(2 * H + h + 1) * hs]

            # content scores: q @ k^T without materializing a transpose.
            content = lax.dot_general(q, k, (((1,), (1,)), ((), ())),
                                      preferred_element_type=jnp.float32)   # (T, T)

            # Transformer-XL relative shift of this head's position scores.
            s = pos_all[r0:r0 + T, h * REL_PAD:(h + 1) * REL_PAD]           # (T, REL_PAD)
            pos = shift(s, T)                                               # (T, T)

            wei = content + pos + mask              # additive causal mask, stays f32
            m = jnp.max(wei, axis=-1, keepdims=True)
            e = jnp.exp(wei - m)
            p = e * pl.reciprocal(jnp.sum(e, axis=-1, keepdims=True), approx=True)
            # TODO(synk): attention-weight dropout omitted (eval-mode identity).

            head_out = jnp.dot(p.astype(jnp.bfloat16), v,
                               preferred_element_type=jnp.float32)          # (T, hs)
            # Accumulate straight into the output projection (no head concat).
            contrib = jnp.dot(head_out.astype(jnp.bfloat16), wp_ref[h],
                              preferred_element_type=jnp.float32)           # (T, C)
            acc = contrib if acc is None else acc + contrib

        # TODO(synk): output dropout omitted (eval-mode identity).
        o_ref[b] = (acc + bias).astype(o_ref.dtype)


# ------------------------------------------------------------------ wrapper --
def relative_multi_head_attention(x, params, *, batch_block=None):
    """x: (B, T, C) float32; params: dict of stacked per-head weights."""
    B, T, C = x.shape
    H, hs = NUM_HEADS, HEAD_SIZE
    assert C == N_EMBD and T <= BLOCK_SIZE

    if batch_block is None:
        # Pack batch into each grid step to amortize per-step (~0.35us) overhead,
        # but keep >= 2 grid steps when possible so both v7x TensorCores get work.
        batch_block = max(1, B // 2)
    while B % batch_block:
        batch_block -= 1

    wq, wk, wv = params["wq"], params["wk"], params["wv"]          # (H, C, hs)
    rel_table = params["rel_pos_embedding"]                        # (H, 2*BS-1, hs)
    wp, bp = params["proj_w"], params["proj_b"]                    # (H*hs, C), (1, C)

    # --- one-time host-side repacking (weights only, no O(T^2) activations) ---
    # Fused lane-dense QKV weight (C, 3*H*hs) = [Q heads | K heads | V heads];
    # the content scale hs**-0.5 is folded into the K columns (exact).
    to_cols = lambda w: jnp.transpose(w, (1, 0, 2)).reshape(C, H * hs)
    wqkv = jnp.concatenate(
        [to_cols(wq), to_cols(wk) * (hs ** -0.5), to_cols(wv)],
        axis=-1).astype(jnp.bfloat16)
    # Block-diagonal, lane-padded, pre-transposed rel-pos table: head h occupies
    # rows [h*hs,(h+1)*hs) x cols [h*REL_PAD,(h+1)*REL_PAD), so one matmul gives
    # every head's (T, REL_PAD) position scores.
    rel_t = jnp.pad(jnp.transpose(rel_table, (0, 2, 1)),
                    ((0, 0), (0, 0), (0, REL_PAD - REL_LEN)))      # (H, hs, REL_PAD)
    rel_bd = (rel_t[:, :, None, :] *
              jnp.eye(H, dtype=rel_t.dtype)[:, None, :, None]
              ).reshape(H * hs, H * REL_PAD).astype(jnp.bfloat16)  # (H*hs, H*REL_PAD)
    wp3 = wp.reshape(H, hs, C).astype(jnp.bfloat16)                # per-head proj weight
    bp_f32 = bp.astype(jnp.float32)
    # Additive causal mask (0 on/below diagonal, -1e30 above); stays f32.
    add_mask = jnp.where(jnp.tril(jnp.ones((T, T), dtype=bool)),
                         0.0, -1e30).astype(jnp.float32)
    x_bf = x.astype(jnp.bfloat16)

    use_roll = _roll_shift_is_valid()

    cost = pl.CostEstimate(
        flops=B * (2 * T * C * 3 * H * hs                      # fused QKV
                   + 2 * T * (H * hs) * (H * REL_PAD)          # block-diag pos scores
                   + H * (2 * T * T * hs                       # q @ k^T
                          + 2 * T * T * hs                     # p @ v
                          + 2 * T * hs * C)),                  # per-head projection
        transcendentals=B * H * (T * T + T),                   # exp + reciprocal
        bytes_accessed=int(x_bf.size * 2 + wqkv.size * 2 + rel_bd.size * 2
                           + wp3.size * 2 + bp_f32.size * 4 + add_mask.size * 4
                           + B * T * C * 4),
    )

    kernel = functools.partial(_fused_rel_mha_kernel, use_roll=use_roll)

    # TODO(synk): at production sizes (block_size=256, n_embd=256) additionally
    # tile the query axis flash-style with an online softmax, head-batch the
    # score/PV matmuls, present a lane-dense (rows, 128) output slab, and
    # single-buffer the resident weight blocks (pipeline_mode=pl.Buffered(1)).
    return pl.pallas_call(
        kernel,
        out_shape=jax.ShapeDtypeStruct((B, T, C), x.dtype),
        grid=(B // batch_block,),
        in_specs=[
            pl.BlockSpec((batch_block, T, C), lambda i: (i, 0, 0)),  # x (per batch block)
            pl.BlockSpec((C, 3 * H * hs), lambda i: (0, 0)),         # fused QKV weight (resident)
            pl.BlockSpec((H * hs, H * REL_PAD), lambda i: (0, 0)),   # block-diag rel table (resident)
            pl.BlockSpec((H, hs, C), lambda i: (0, 0, 0)),           # proj weight (resident)
            pl.BlockSpec((1, C), lambda i: (0, 0)),                  # proj bias (resident)
            pl.BlockSpec((T, T), lambda i: (0, 0)),                  # additive causal mask
        ],
        out_specs=pl.BlockSpec((batch_block, T, C), lambda i: (i, 0, 0)),
        compiler_params=pltpu.CompilerParams(
            dimension_semantics=("parallel",)),
        cost_estimate=cost,
    )(x_bf, wqkv, rel_bd, wp3, bp_f32, add_mask)


# -------------------------------------------------------- pure-JAX reference --
def _reference(x, params):
    B, T, C = x.shape
    wq, wk, wv = params["wq"], params["wk"], params["wv"]
    rel_table = params["rel_pos_embedding"]
    idx = (jnp.arange(T)[None, :] - jnp.arange(T)[:, None]) + (BLOCK_SIZE - 1)
    outs = []
    for h in range(NUM_HEADS):
        q = x @ wq[h]
        k = x @ wk[h]
        v = x @ wv[h]
        content = q @ jnp.swapaxes(k, -2, -1) * (HEAD_SIZE ** -0.5)
        rel = rel_table[h][idx]                                   # (T, T, hs)
        pos = jnp.sum(q[:, :, None, :] * rel[None], axis=-1)      # (B, T, T)
        wei = content + pos
        mask = jnp.tril(jnp.ones((T, T), dtype=bool))
        wei = jnp.where(mask[None], wei, -jnp.inf)
        wei = jax.nn.softmax(wei, axis=-1)
        outs.append(wei @ v)
    cat = jnp.concatenate(outs, axis=-1)
    return cat @ params["proj_w"] + params["proj_b"][0]


# -------------------------------------------------------------------- main --
def _init_params(key):
    k1, k2, k3, k4, k5, k6 = jax.random.split(key, 6)
    bound = 1.0 / math.sqrt(N_EMBD)
    pbound = 1.0 / math.sqrt(NUM_HEADS * HEAD_SIZE)
    return {
        # per-head linear weights stored as (C, head_size) == torch_weight.T
        "wq": jax.random.uniform(k1, (NUM_HEADS, N_EMBD, HEAD_SIZE), jnp.float32, -bound, bound),
        "wk": jax.random.uniform(k2, (NUM_HEADS, N_EMBD, HEAD_SIZE), jnp.float32, -bound, bound),
        "wv": jax.random.uniform(k3, (NUM_HEADS, N_EMBD, HEAD_SIZE), jnp.float32, -bound, bound),
        # rel_pos_embedding ~ Normal(0, 0.02), per head: (2*block_size-1, head_size)
        "rel_pos_embedding": 0.02 * jax.random.normal(
            k4, (NUM_HEADS, 2 * BLOCK_SIZE - 1, HEAD_SIZE), jnp.float32),
        # output projection: (H*hs, n_embd) == torch_weight.T, plus bias
        "proj_w": jax.random.uniform(k5, (NUM_HEADS * HEAD_SIZE, N_EMBD), jnp.float32, -pbound, pbound),
        "proj_b": jax.random.uniform(k6, (1, N_EMBD), jnp.float32, -pbound, pbound),
    }


if __name__ == "__main__":
    key = jax.random.PRNGKey(0)
    kx, kp = jax.random.split(key)

    B, T = 2, 8
    x = jax.random.normal(kx, (B, T, N_EMBD), jnp.float32)
    params = _init_params(kp)

    out = jax.block_until_ready(relative_multi_head_attention(x, params))

    ref = _reference(x, params)
    np.testing.assert_allclose(np.asarray(out), np.asarray(ref), rtol=2e-2, atol=2e-2)

    print("KERNEL_OK")
</pallas_src>

<mosaic_0001>
module attributes {stable_mosaic.version = 11 : i64} {
  func.func @probe(%arg0: memref<8x128xf32, #tpu.memory_space<vmem>>, %arg1: memref<8x8xf32, #tpu.memory_space<vmem>>) attributes {dimension_semantics = [], scalar_prefetch = 0 : i64, scratch_operands = 0 : i64, tpu.core_type = #tpu.core_type<tc>} {
    %c0 = arith.constant 0 : index
    %c0_0 = arith.constant 0 : index
    %0 = vector.load %arg0[%c0, %c0_0] : memref<8x128xf32, #tpu.memory_space<vmem>>, vector<8x128xf32>
    %c113_i32 = arith.constant 113 : i32
    %1 = tpu.dynamic_rotate %0 by %c113_i32 dim 1 {stride = 1 : si32, stride_dimension = 0 : si32} : vector<8x128xf32>, i32 -> vector<8x128xf32>
    %2 = vector.extract_strided_slice %1 {offsets = [0, 0], sizes = [8, 8], strides = [1, 1]} : vector<8x128xf32> to vector<8x8xf32>
    %c0_1 = arith.constant 0 : index
    %c0_2 = arith.constant 0 : index
    %3 = vector.load %arg1[%c0_1, %c0_2] : memref<8x8xf32, #tpu.memory_space<vmem>>, vector<8x8xf32>
    tpu.vector_store %arg1[%c0_1, %c0_2], %2 {strides = array<i32>} : memref<8x8xf32, #tpu.memory_space<vmem>>, vector<8x8xf32>,
    return
  }
}

module attributes {stable_mosaic.version = 11 : i64} {
  func.func @_fused_rel_mha_kernel(%arg0: i32, %arg1: memref<1x8x32xbf16, #tpu.memory_space<vmem>>, %arg2: memref<32x192xbf16, #tpu.memory_space<vmem>>, %arg3: memref<64x512xbf16, #tpu.memory_space<vmem>>, %arg4: memref<4x16x32xbf16, #tpu.memory_space<vmem>>, %arg5: memref<1x32xf32, #tpu.memory_space<vmem>>, %arg6: memref<8x8xf32, #tpu.memory_space<vmem>>, %arg7: memref<1x8x32xf32, #tpu.memory_space<vmem>>) attributes {dimension_semantics = [#tpu.dimension_semantics<parallel>], iteration_bounds = array<i64: 2>, scalar_prefetch = 0 : i64, scratch_operands = 0 : i64, tpu.core_type = #tpu.core_type<tc>, window_params = [{transform_indices = @transform_0, window_bounds = array<i64: 1, 8, 32>}, {pipeline_mode = #tpu.pipeline_mode<synchronous>, transform_indices = @transform_1, window_bounds = array<i64: 32, 192>}, {pipeline_mode = #tpu.pipeline_mode<synchronous>, transform_indices = @transform_2, window_bounds = array<i64: 64, 512>}, {pipeline_mode = #tpu.pipeline_mode<synchronous>, transform_indices = @transform_3, window_bounds = array<i64: 4, 16, 32>}, {pipeline_mode = #tpu.pipeline_mode<synchronous>, transform_indices = @transform_4, window_bounds = array<i64: 1, 32>}, {pipeline_mode = #tpu.pipeline_mode<synchronous>, transform_indices = @transform_5, window_bounds = array<i64: 8, 8>}, {transform_indices = @transform_6, window_bounds = array<i64: 1, 8, 32>}]} {
    %c0 = arith.constant 0 : index
    %c0_0 = arith.constant 0 : index
    %c0_1 = arith.constant 0 : index
    %0 = vector.load %arg1[%c0, %c0_0, %c0_1] : memref<1x8x32xbf16, #tpu.memory_space<vmem>>, vector<1x8x32xbf16>
    %1 = vector.shape_cast %0 : vector<1x8x32xbf16> to vector<8x32xbf16>
    %c0_2 = arith.constant 0 : index
    %c0_3 = arith.constant 0 : index
    %2 = vector.load %arg2[%c0_2, %c0_3] : memref<32x192xbf16, #tpu.memory_space<vmem>>, vector<32x192xbf16>
    %cst = arith.constant dense<0.000000e+00> : vector<8x192xf32>
    %3 = tpu.matmul %1, %2, %cst {dimension_numbers = #tpu.dot_dimension_numbers<[1], [0], [0], [1], [0, 0, 1, 1], [], []>} : vector<8x32xbf16>, vector<32x192xbf16>, vector<8x192xf32> -> vector<8x192xf32>
    %4 = arith.truncf %3 : vector<8x192xf32> to vector<8x192xbf16>
    %5 = vector.extract_strided_slice %4 {offsets = [0, 0], sizes = [8, 64], strides = [1, 1]} : vector<8x192xbf16> to vector<8x64xbf16>
    %c0_4 = arith.constant 0 : index
    %c0_5 = arith.constant 0 : index
    %6 = vector.load %arg3[%c0_4, %c0_5] : memref<64x512xbf16, #tpu.memory_space<vmem>>, vector<64x512xbf16>
    %cst_6 = arith.constant dense<0.000000e+00> : vector<8x512xf32>
    %7 = tpu.matmul %5, %6, %cst_6 {dimension_numbers = #tpu.dot_dimension_numbers<[1], [0], [0], [1], [0, 0, 1, 1], [], []>} : vector<8x64xbf16>, vector<64x512xbf16>, vector<8x512xf32> -> vector<8x512xf32>
    %c0_7 = arith.constant 0 : index
    %c0_8 = arith.constant 0 : index
    %8 = vector.load %arg6[%c0_7, %c0_8] : memref<8x8xf32, #tpu.memory_space<vmem>>, vector<8x8xf32>
    %c0_9 = arith.constant 0 : index
    %c0_10 = arith.constant 0 : index
    %9 = vector.load %arg5[%c0_9, %c0_10] : memref<1x32xf32, #tpu.memory_space<vmem>>, vector<1x32xf32>
    %10 = vector.extract_strided_slice %4 {offsets = [0, 0], sizes = [8, 16], strides = [1, 1]} : vector<8x192xbf16> to vector<8x16xbf16>
    %11 = vector.extract_strided_slice %4 {offsets = [0, 64], sizes = [8, 16], strides = [1, 1]} : vector<8x192xbf16> to vector<8x16xbf16>
    %12 = vector.extract_strided_slice %4 {offsets = [0, 128], sizes = [8, 16], strides = [1, 1]} : vector<8x192xbf16> to vector<8x16xbf16>
    %cst_11 = arith.constant dense<0.000000e+00> : vector<8x8xf32>
    %13 = tpu.matmul %10, %11, %cst_11 {dimension_numbers = #tpu.dot_dimension_numbers<[1], [1], [0], [0], [0, 0, 1, 0], [], []>} : vector<8x16xbf16>, vector<8x16xbf16>, vector<8x8xf32> -> vector<8x8xf32>
    %14 = vector.extract_strided_slice %7 {offsets = [0, 0], sizes = [8, 128], strides = [1, 1]} : vector<8x512xf32> to vector<8x128xf32>
    %15 = vector.extract_strided_slice %14 {offsets = [0, 15], sizes = [1, 8], strides = [1, 1]} : vector<8x128xf32> to vector<1x8xf32>
    %16 = vector.extract_strided_slice %14 {offsets = [1, 14], sizes = [1, 8], strides = [1, 1]} : vector<8x128xf32> to vector<1x8xf32>
    %17 = vector.extract_strided_slice %14 {offsets = [2, 13], sizes = [1, 8], strides = [1, 1]} : vector<8x128xf32> to vector<1x8xf32>
    %18 = vector.extract_strided_slice %14 {offsets = [3, 12], sizes = [1, 8], strides = [1, 1]} : vector<8x128xf32> to vector<1x8xf32>
    %19 = vector.extract_strided_slice %14 {offsets = [4, 11], sizes = [1, 8], strides = [1, 1]} : vector<8x128xf32> to vector<1x8xf32>
    %20 = vector.extract_strided_slice %14 {offsets = [5, 10], sizes = [1, 8], strides = [1, 1]} : vector<8x128xf32> to vector<1x8xf32>
    %21 = vector.extract_strided_slice %14 {offsets = [6, 9], sizes = [1, 8], strides = [1, 1]} : vector<8x128xf32> to vector<1x8xf32>
    %22 = vector.extract_strided_slice %14 {offsets = [7, 8], sizes = [1, 8], strides = [1, 1]} : vector<8x128xf32> to vector<1x8xf32>
    %23 = tpu.concatenate %15, %16, %17, %18, %19, %20, %21, %22 in 0 : vector<1x8xf32>, vector<1x8xf32>, vector<1x8xf32>, vector<1x8xf32>, vector<1x8xf32>, vector<1x8xf32>, vector<1x8xf32>, vector<1x8xf32> -> vector<8x8xf32>
    %24 = arith.addf %13, %23 : vector<8x8xf32>
    %25 = arith.addf %24, %8 : vector<8x8xf32>
    %cst_12 = arith.constant dense<0xFF800000> : vector<8xf32>
    %26 = vector.multi_reduction <maximumf>, %25, %cst_12 [1] : vector<8x8xf32> to vector<8xf32>
    %27 = vector.shape_cast %26 : vector<8xf32> to vector<8x1xf32>
    %28 = vector.broadcast %27 : vector<8x1xf32> to vector<8x8xf32>
    %29 = arith.subf %25, %28 : vector<8x8xf32>
    %30 = math.exp %29 : vector<8x8xf32>
    %cst_13 = arith.constant dense<0.000000e+00> : vector<8xf32>
    %31 = vector.multi_reduction <add>, %30, %cst_13 [1] : vector<8x8xf32> to vector<8xf32>
    %32 = vector.shape_cast %31 : vector<8xf32> to vector<8x1xf32>
    %33 = tpu.reciprocal %32 {approx = true} : vector<8x1xf32> -> vector<8x1xf32>
    %34 = vector.broadcast %33 : vector<8x1xf32> to vector<8x8xf32>
    %35 = arith.mulf %30, %34 : vector<8x8xf32>
    %36 = arith.truncf %35 : vector<8x8xf32> to vector<8x8xbf16>
    %cst_14 = arith.constant dense<0.000000e+00> : vector<8x16xf32>
    %37 = tpu.matmul %36, %12, %cst_14 {dimension_numbers = #tpu.dot_dimension_numbers<[1], [0], [0], [1], [0, 0, 1, 1], [], []>} : vector<8x8xbf16>, vector<8x16xbf16>, vector<8x16xf32> -> vector<8x16xf32>
    %38 = arith.truncf %37 : vector<8x16xf32> to vector<8x16xbf16>
    %c0_15 = arith.constant 0 : index
    %c0_16 = arith.constant 0 : index
    %c0_17 = arith.constant 0 : index
    %39 = vector.load %arg4[%c0_15, %c0_16, %c0_17] : memref<4x16x32xbf16, #tpu.memory_space<vmem>>, vector<1x16x32xbf16>
    %40 = vector.shape_cast %39 : vector<1x16x32xbf16> to vector<16x32xbf16>
    %cst_18 = arith.constant dense<0.000000e+00> : vector<8x32xf32>
    %41 = tpu.matmul %38, %40, %cst_18 {dimension_numbers = #tpu.dot_dimension_numbers<[1], [0], [0], [1], [0, 0, 1, 1], [], []>} : vector<8x16xbf16>, vector<16x32xbf16>, vector<8x32xf32> -> vector<8x32xf32>
    %42 = vector.extract_strided_slice %4 {offsets = [0, 16], sizes = [8, 16], strides = [1, 1]} : vector<8x192xbf16> to vector<8x16xbf16>
    %43 = vector.extract_strided_slice %4 {offsets = [0, 80], sizes = [8, 16], strides = [1, 1]} : vector<8x192xbf16> to vector<8x16xbf16>
    %44 = vector.extract_strided_slice %4 {offsets = [0, 144], sizes = [8, 16], strides = [1, 1]} : vector<8x192xbf16> to vector<8x16xbf16>
    %cst_19 = arith.constant dense<0.000000e+00> : vector<8x8xf32>
    %45 = tpu.matmul %42, %43, %cst_19 {dimension_numbers = #tpu.dot_dimension_numbers<[1], [1], [0], [0], [0, 0, 1, 0], [], []>} : vector<8x16xbf16>, vector<8x16xbf16>, vector<8x8xf32> -> vector<8x8xf32>
    %46 = vector.extract_strided_slice %7 {offsets = [0, 128], sizes = [8, 128], strides = [1, 1]} : vector<8x512xf32> to vector<8x128xf32>
    %47 = vector.extract_strided_slice %46 {offsets = [0, 15], sizes = [1, 8], strides = [1, 1]} : vector<8x128xf32> to vector<1x8xf32>
    %48 = vector.extract_strided_slice %46 {offsets = [1, 14], sizes = [1, 8], strides = [1, 1]} : vector<8x128xf32> to vector<1x8xf32>
    %49 = vector.extract_strided_slice %46 {offsets = [2, 13], sizes = [1, 8], strides = [1, 1]} : vector<8x128xf32> to vector<1x8xf32>
    %50 = vector.extract_strided_slice %46 {offsets = [3, 12], sizes = [1, 8], strides = [1, 1]} : vector<8x128xf32> to vector<1x8xf32>
    %51 = vector.extract_strided_slice %46 {offsets = [4, 11], sizes = [1, 8], strides = [1, 1]} : vector<8x128xf32> to vector<1x8xf32>
    %52 = vector.extract_strided_slice %46 {offsets = [5, 10], sizes = [1, 8], strides = [1, 1]} : vector<8x128xf32> to vector<1x8xf32>
    %53 = vector.extract_strided_slice %46 {offsets = [6, 9], sizes = [1, 8], strides = [1, 1]} : vector<8x128xf32> to vector<1x8xf32>
    %54 = vector.extract_strided_slice %46 {offsets = [7, 8], sizes = [1, 8], strides = [1, 1]} : vector<8x128xf32> to vector<1x8xf32>
    %55 = tpu.concatenate %47, %48, %49, %50, %51, %52, %53, %54 in 0 : vector<1x8xf32>, vector<1x8xf32>, vector<1x8xf32>, vector<1x8xf32>, vector<1x8xf32>, vector<1x8xf32>, vector<1x8xf32>, vector<1x8xf32> -> vector<8x8xf32>
    %56 = arith.addf %45, %55 : vector<8x8xf32>
    %57 = arith.addf %56, %8 : vector<8x8xf32>
    %cst_20 = arith.constant dense<0xFF800000> : vector<8xf32>
    %58 = vector.multi_reduction <maximumf>, %57, %cst_20 [1] : vector<8x8xf32> to vector<8xf32>
    %59 = vector.shape_cast %58 : vector<8xf32> to vector<8x1xf32>
    %60 = vector.broadcast %59 : vector<8x1xf32> to vector<8x8xf32>
    %61 = arith.subf %57, %60 : vector<8x8xf32>
    %62 = math.exp %61 : vector<8x8xf32>
    %cst_21 = arith.constant dense<0.000000e+00> : vector<8xf32>
    %63 = vector.multi_reduction <add>, %62, %cst_21 [1] : vector<8x8xf32> to vector<8xf32>
    %64 = vector.shape_cast %63 : vector<8xf32> to vector<8x1xf32>
    %65 = tpu.reciprocal %64 {approx = true} : vector<8x1xf32> -> vector<8x1xf32>
    %66 = vector.broadcast %65 : vector<8x1xf32> to vector<8x8xf32>
    %67 = arith.mulf %62, %66 : vector<8x8xf32>
    %68 = arith.truncf %67 : vector<8x8xf32> to vector<8x8xbf16>
    %cst_22 = arith.constant dense<0.000000e+00> : vector<8x16xf32>
    %69 = tpu.matmul %68, %44, %cst_22 {dimension_numbers = #tpu.dot_dimension_numbers<[1], [0], [0], [1], [0, 0, 1, 1], [], []>} : vector<8x8xbf16>, vector<8x16xbf16>, vector<8x16xf32> -> vector<8x16xf32>
    %70 = arith.truncf %69 : vector<8x16xf32> to vector<8x16xbf16>
    %c1 = arith.constant 1 : index
    %c0_23 = arith.constant 0 : index
    %c0_24 = arith.constant 0 : index
    %71 = vector.load %arg4[%c1, %c0_23, %c0_24] : memref<4x16x32xbf16, #tpu.memory_space<vmem>>, vector<1x16x32xbf16>
    %72 = vector.shape_cast %71 : vector<1x16x32xbf16> to vector<16x32xbf16>
    %cst_25 = arith.constant dense<0.000000e+00> : vector<8x32xf32>
    %73 = tpu.matmul %70, %72, %cst_25 {dimension_numbers = #tpu.dot_dimension_numbers<[1], [0], [0], [1], [0, 0, 1, 1], [], []>} : vector<8x16xbf16>, vector<16x32xbf16>, vector<8x32xf32> -> vector<8x32xf32>
    %74 = arith.addf %41, %73 : vector<8x32xf32>
    %75 = vector.extract_strided_slice %4 {offsets = [0, 32], sizes = [8, 16], strides = [1, 1]} : vector<8x192xbf16> to vector<8x16xbf16>
    %76 = vector.extract_strided_slice %4 {offsets = [0, 96], sizes = [8, 16], strides = [1, 1]} : vector<8x192xbf16> to vector<8x16xbf16>
    %77 = vector.extract_strided_slice %4 {offsets = [0, 160], sizes = [8, 16], strides = [1, 1]} : vector<8x192xbf16> to vector<8x16xbf16>
    %cst_26 = arith.constant dense<0.000000e+00> : vector<8x8xf32>
    %78 = tpu.matmul %75, %76, %cst_26 {dimension_numbers = #tpu.dot_dimension_numbers<[1], [1], [0], [0], [0, 0, 1, 0], [], []>} : vector<8x16xbf16>, vector<8x16xbf16>, vector<8x8xf32> -> vector<8x8xf32>
    %79 = vector.extract_strided_slice %7 {offsets = [0, 256], sizes = [8, 128], strides = [1, 1]} : vector<8x512xf32> to vector<8x128xf32>
    %80 = vector.extract_strided_slice %79 {offsets = [0, 15], sizes = [1, 8], strides = [1, 1]} : vector<8x128xf32> to vector<1x8xf32>
    %81 = vector.extract_strided_slice %79 {offsets = [1, 14], sizes = [1, 8], strides = [1, 1]} : vector<8x128xf32> to vector<1x8xf32>
    %82 = vector.extract_strided_slice %79 {offsets = [2, 13], sizes = [1, 8], strides = [1, 1]} : vector<8x128xf32> to vector<1x8xf32>
    %83 = vector.extract_strided_slice %79 {offsets = [3, 12], sizes = [1, 8], strides = [1, 1]} : vector<8x128xf32> to vector<1x8xf32>
    %84 = vector.extract_strided_slice %79 {offsets = [4, 11], sizes = [1, 8], strides = [1, 1]} : vector<8x128xf32> to vector<1x8xf32>
    %85 = vector.extract_strided_slice %79 {offsets = [5, 10], sizes = [1, 8], strides = [1, 1]} : vector<8x128xf32> to vector<1x8xf32>
    %86 = vector.extract_strided_slice %79 {offsets = [6, 9], sizes = [1, 8], strides = [1, 1]} : vector<8x128xf32> to vector<1x8xf32>
    %87 = vector.extract_strided_slice %79 {offsets = [7, 8], sizes = [1, 8], strides = [1, 1]} : vector<8x128xf32> to vector<1x8xf32>
    %88 = tpu.concatenate %80, %81, %82, %83, %84, %85, %86, %87 in 0 : vector<1x8xf32>, vector<1x8xf32>, vector<1x8xf32>, vector<1x8xf32>, vector<1x8xf32>, vector<1x8xf32>, vector<1x8xf32>, vector<1x8xf32> -> vector<8x8xf32>
    %89 = arith.addf %78, %88 : vector<8x8xf32>
    %90 = arith.addf %89, %8 : vector<8x8xf32>
    %cst_27 = arith.constant dense<0xFF800000> : vector<8xf32>
    %91 = vector.multi_reduction <maximumf>, %90, %cst_27 [1] : vector<8x8xf32> to vector<8xf32>
    %92 = vector.shape_cast %91 : vector<8xf32> to vector<8x1xf32>
    %93 = vector.broadcast %92 : vector<8x1xf32> to vector<8x8xf32>
    %94 = arith.subf %90, %93 : vector<8x8xf32>
    %95 = math.exp %94 : vector<8x8xf32>
    %cst_28 = arith.constant dense<0.000000e+00> : vector<8xf32>
    %96 = vector.multi_reduction <add>, %95, %cst_28 [1] : vector<8x8xf32> to vector<8xf32>
    %97 = vector.shape_cast %96 : vector<8xf32> to vector<8x1xf32>
    %98 = tpu.reciprocal %97 {approx = true} : vector<8x1xf32> -> vector<8x1xf32>
    %99 = vector.broadcast %98 : vector<8x1xf32> to vector<8x8xf32>
    %100 = arith.mulf %95, %99 : vector<8x8xf32>
    %101 = arith.truncf %100 : vector<8x8xf32> to vector<8x8xbf16>
    %cst_29 = arith.constant dense<0.000000e+00> : vector<8x16xf32>
    %102 = tpu.matmul %101, %77, %cst_29 {dimension_numbers = #tpu.dot_dimension_numbers<[1], [0], [0], [1], [0, 0, 1, 1], [], []>} : vector<8x8xbf16>, vector<8x16xbf16>, vector<8x16xf32> -> vector<8x16xf32>
    %103 = arith.truncf %102 : vector<8x16xf32> to vector<8x16xbf16>
    %c2 = arith.constant 2 : index
    %c0_30 = arith.constant 0 : index
    %c0_31 = arith.constant 0 : index
    %104 = vector.load %arg4[%c2, %c0_30, %c0_31] : memref<4x16x32xbf16, #tpu.memory_space<vmem>>, vector<1x16x32xbf16>
    %105 = vector.shape_cast %104 : vector<1x16x32xbf16> to vector<16x32xbf16>
    %cst_32 = arith.constant dense<0.000000e+00> : vector<8x32xf32>
    %106 = tpu.matmul %103, %105, %cst_32 {dimension_numbers = #tpu.dot_dimension_numbers<[1], [0], [0], [1], [0, 0, 1, 1], [], []>} : vector<8x16xbf16>, vector<16x32xbf16>, vector<8x32xf32> -> vector<8x32xf32>
    %107 = arith.addf %74, %106 : vector<8x32xf32>
    %108 = vector.extract_strided_slice %4 {offsets = [0, 48], sizes = [8, 16], strides = [1, 1]} : vector<8x192xbf16> to vector<8x16xbf16>
    %109 = vector.extract_strided_slice %4 {offsets = [0, 112], sizes = [8, 16], strides = [1, 1]} : vector<8x192xbf16> to vector<8x16xbf16>
    %110 = vector.extract_strided_slice %4 {offsets = [0, 176], sizes = [8, 16], strides = [1, 1]} : vector<8x192xbf16> to vector<8x16xbf16>
    %cst_33 = arith.constant dense<0.000000e+00> : vector<8x8xf32>
    %111 = tpu.matmul %108, %109, %cst_33 {dimension_numbers = #tpu.dot_dimension_numbers<[1], [1], [0], [0], [0, 0, 1, 0], [], []>} : vector<8x16xbf16>, vector<8x16xbf16>, vector<8x8xf32> -> vector<8x8xf32>
    %112 = vector.extract_strided_slice %7 {offsets = [0, 384], sizes = [8, 128], strides = [1, 1]} : vector<8x512xf32> to vector<8x128xf32>
    %113 = vector.extract_strided_slice %112 {offsets = [0, 15], sizes = [1, 8], strides = [1, 1]} : vector<8x128xf32> to vector<1x8xf32>
    %114 = vector.extract_strided_slice %112 {offsets = [1, 14], sizes = [1, 8], strides = [1, 1]} : vector<8x128xf32> to vector<1x8xf32>
    %115 = vector.extract_strided_slice %112 {offsets = [2, 13], sizes = [1, 8], strides = [1, 1]} : vector<8x128xf32> to vector<1x8xf32>
    %116 = vector.extract_strided_slice %112 {offsets = [3, 12], sizes = [1, 8], strides = [1, 1]} : vector<8x128xf32> to vector<1x8xf32>
    %117 = vector.extract_strided_slice %112 {offsets = [4, 11], sizes = [1, 8], strides = [1, 1]} : vector<8x128xf32> to vector<1x8xf32>
    %118 = vector.extract_strided_slice %112 {offsets = [5, 10], sizes = [1, 8], strides = [1, 1]} : vector<8x128xf32> to vector<1x8xf32>
    %119 = vector.extract_strided_slice %112 {offsets = [6, 9], sizes = [1, 8], strides = [1, 1]} : vector<8x128xf32> to vector<1x8xf32>
    %120 = vector.extract_strided_slice %112 {offsets = [7, 8], sizes = [1, 8], strides = [1, 1]} : vector<8x128xf32> to vector<1x8xf32>
    %121 = tpu.concatenate %113, %114, %115, %116, %117, %118, %119, %120 in 0 : vector<1x8xf32>, vector<1x8xf32>, vector<1x8xf32>, vector<1x8xf32>, vector<1x8xf32>, vector<1x8xf32>, vector<1x8xf32>, vector<1x8xf32> -> vector<8x8xf32>
    %122 = arith.addf %111, %121 : vector<8x8xf32>
    %123 = arith.addf %122, %8 : vector<8x8xf32>
    %cst_34 = arith.constant dense<0xFF800000> : vector<8xf32>
    %124 = vector.multi_reduction <maximumf>, %123, %cst_34 [1] : vector<8x8xf32> to vector<8xf32>
    %125 = vector.shape_cast %124 : vector<8xf32> to vector<8x1xf32>
    %126 = vector.broadcast %125 : vector<8x1xf32> to vector<8x8xf32>
    %127 = arith.subf %123, %126 : vector<8x8xf32>
    %128 = math.exp %127 : vector<8x8xf32>
    %cst_35 = arith.constant dense<0.000000e+00> : vector<8xf32>
    %129 = vector.multi_reduction <add>, %128, %cst_35 [1] : vector<8x8xf32> to vector<8xf32>
    %130 = vector.shape_cast %129 : vector<8xf32> to vector<8x1xf32>
    %131 = tpu.reciprocal %130 {approx = true} : vector<8x1xf32> -> vector<8x1xf32>
    %132 = vector.broadcast %131 : vector<8x1xf32> to vector<8x8xf32>
    %133 = arith.mulf %128, %132 : vector<8x8xf32>
    %134 = arith.truncf %133 : vector<8x8xf32> to vector<8x8xbf16>
    %cst_36 = arith.constant dense<0.000000e+00> : vector<8x16xf32>
    %135 = tpu.matmul %134, %110, %cst_36 {dimension_numbers = #tpu.dot_dimension_numbers<[1], [0], [0], [1], [0, 0, 1, 1], [], []>} : vector<8x8xbf16>, vector<8x16xbf16>, vector<8x16xf32> -> vector<8x16xf32>
    %136 = arith.truncf %135 : vector<8x16xf32> to vector<8x16xbf16>
    %c3 = arith.constant 3 : index
    %c0_37 = arith.constant 0 : index
    %c0_38 = arith.constant 0 : index
    %137 = vector.load %arg4[%c3, %c0_37, %c0_38] : memref<4x16x32xbf16, #tpu.memory_space<vmem>>, vector<1x16x32xbf16>
    %138 = vector.shape_cast %137 : vector<1x16x32xbf16> to vector<16x32xbf16>
    %cst_39 = arith.constant dense<0.000000e+00> : vector<8x32xf32>
    %139 = tpu.matmul %136, %138, %cst_39 {dimension_numbers = #tpu.dot_dimension_numbers<[1], [0], [0], [1], [0, 0, 1, 1], [], []>} : vector<8x16xbf16>, vector<16x32xbf16>, vector<8x32xf32> -> vector<8x32xf32>
    %140 = arith.addf %107, %139 : vector<8x32xf32>
    %141 = vector.broadcast %9 : vector<1x32xf32> to vector<8x32xf32>
    %142 = arith.addf %140, %141 : vector<8x32xf32>
    %c0_40 = arith.constant 0 : index
    %c0_41 = arith.constant 0 : index
    %c0_42 = arith.constant 0 : index
    %143 = vector.load %arg7[%c0_40, %c0_41, %c0_42] : memref<1x8x32xf32, #tpu.memory_space<vmem>>, vector<1x8x32xf32>
    %144 = vector.shape_cast %143 : vector<1x8x32xf32> to vector<8x32xf32>
    %145 = vector.shape_cast %142 : vector<8x32xf32> to vector<1x8x32xf32>
    tpu.vector_store %arg7[%c0_40, %c0_41, %c0_42], %145 {strides = array<i32>} : memref<1x8x32xf32, #tpu.memory_space<vmem>>, vector<1x8x32xf32>,
    return
  }
  func.func @transform_0(%arg0: i32) -> (i32, i32, i32) {
    %c0_i32 = arith.constant 0 : i32
    %c0_i32_0 = arith.constant 0 : i32
    %c0_i32_1 = arith.constant 0 : i32
    return %arg0, %c0_i32, %c0_i32_0 : i32, i32, i32
  }
  func.func @transform_1(%arg0: i32) -> (i32, i32) {
    %c0_i32 = arith.constant 0 : i32
    %c0_i32_0 = arith.constant 0 : i32
    %c0_i32_1 = arith.constant 0 : i32
    return %c0_i32, %c0_i32_0 : i32, i32
  }
  func.func @transform_2(%arg0: i32) -> (i32, i32) {
    %c0_i32 = arith.constant 0 : i32
    %c0_i32_0 = arith.constant 0 : i32
    %c0_i32_1 = arith.constant 0 : i32
    return %c0_i32, %c0_i32_0 : i32, i32
  }
  func.func @transform_3(%arg0: i32) -> (i32, i32, i32) {
    %c0_i32 = arith.constant 0 : i32
    %c0_i32_0 = arith.constant 0 : i32
    %c0_i32_1 = arith.constant 0 : i32
    %c0_i32_2 = arith.constant 0 : i32
    return %c0_i32, %c0_i32_0, %c0_i32_1 : i32, i32, i32
  }
  func.func @transform_4(%arg0: i32) -> (i32, i32) {
    %c0_i32 = arith.constant 0 : i32
    %c0_i32_0 = arith.constant 0 : i32
    %c0_i32_1 = arith.constant 0 : i32
    return %c0_i32, %c0_i32_0 : i32, i32
  }
  func.func @transform_5(%arg0: i32) -> (i32, i32) {
    %c0_i32 = arith.constant 0 : i32
    %c0_i32_0 = arith.constant 0 : i32
    %c0_i32_1 = arith.constant 0 : i32
    return %c0_i32, %c0_i32_0 : i32, i32
  }
  func.func @transform_6(%arg0: i32) -> (i32, i32, i32) {
    %c0_i32 = arith.constant 0 : i32
    %c0_i32_0 = arith.constant 0 : i32
    %c0_i32_1 = arith.constant 0 : i32
    return %arg0, %c0_i32, %c0_i32_0 : i32, i32, i32
  }
}

</mosaic_0001>

<bundles_post_ra>
// kernel: tpu_custom_call.1
= control target key start
LH: loop header
LB: loop body
LE: loop exit
PB: predicated region body
PF: predicated region fallthrough
CT: control target
= control target key end

     0   :  { %6 = vsyncpa [#allocation3], 0  ;;  %s109_s0 = inlined_call_operand.hbm [shape: f32[8,128], index: 0, kind: input, shape index: {}]   ;;  %s110_s1 = inlined_call_operand.hbm [shape: f32[8,8], index: 1, kind: output, shape index: {}]  }
   0x1   :  { %7 = vsyncpa [#allocation4], 0  ;;  %s90_s6 = smov [#allocation2]  }
   0x2   :  { %s14_s7 = sshll.u32 %s90_s6, 4  ;;  %s15_s7 = int_to_ptr.vmem [resolvable:$true] %s14_s7 }
   0x3   :  { %s54_s8 = scalar_lea.vmem %s15_s7, 128  ;;  %p59_p1 = scmp.lt.s32.totalorder %s15_s7, %s15_s7 }
   0x4   :  { %p55_p0 = scmp.ne.s32.totalorder %s15_s7, %s54_s8  ;;  %p60_p2 = scmp.lt.s32.totalorder %s54_s8, %s54_s8 }
   0x6   :  { %p61_p3 = por %p60_p2, %p59_p1 }
   0x8   :  { %p62_p4 = pnand %p61_p3, %p55_p0 }
   0xa   :  { %65 = shalt.err (!%p62_p4)
}
   0xb   :  { %17 = dma.hbm_to_vmem [thread:$0]  %s109_s0, 128, %s15_s7, [#allocation3]  }
   0xc   :  { %86 = dma.done.wait [#allocation3], 128  }
   0xd   :  { %87 = vsyncadd [#allocation3], 4294967168  ;;  %v21_v0 = vld [vmem:[#allocation2] sm:$0xff]  ;;  %s91_s11 = smov 369   ;;  %s92_s12 = smov [#allocation5]   ;;  %vm26_vm0 = vcmask 64512  }
   0xe   :  { %24 = vrot.lane.b32.xlu0 %v21_v0, %s91_s11  ;;  %s34_s13 = sshll.u32 %s92_s12, 4  ;;  %s35_s13 = int_to_ptr.vmem [resolvable:$true] %s34_s13 }
   0xf   :  { %s66_s14 = scalar_lea.vmem %s35_s13, 128  ;;  %p71_p6 = scmp.lt.s32.totalorder %s35_s13, %s35_s13 }
  0x10   :  { %p67_p5 = scmp.ne.s32.totalorder %s35_s13, %s66_s14  ;;  %p72_p7 = scmp.lt.s32.totalorder %s66_s14, %s66_s14 }
  0x12   :  { %p73_p8 = por %p72_p7, %p71_p6 }
  0x14   :  { %p74_p9 = pnand %p73_p8, %p67_p5 }
  0x80   :  { %v25_v1 = vpop.permute.xlu0 %24 }
  0x81   :  { %27 = vst.msk [vmem:[#allocation5] sm:$0xff] %vm26_vm0, %v25_v1 }
  0x82   :  { %77 = shalt.err (!%p74_p9)
}
  0x83   :  { %37 = dma.vmem_to_hbm [thread:$0]  %s35_s13, 128, %s110_s1, [#allocation4]  }
  0x84   :  { %88 = dma.done.wait [#allocation4], 128  }
  0x85   :  { %89 = vsyncadd [#allocation4], 4294967168 }
  0x86   :  { %41 = vsyncpa [#allocation3], 1 }
  0x87   :  { %42 = vsyncpa [#allocation4], 1 }

// kernel: tpu_custom_call.1
= control target key start
LH: loop header
LB: loop body
LE: loop exit
PB: predicated region body
PF: predicated region fallthrough
CT: control target
= control target key end

     0   :  { %s2408_s0 = inlined_call_operand.hbm [shape: bf16[2,8,32], index: 0, kind: input, shape index: {}]   ;;  %s2409_s1 = inlined_call_operand.hbm [shape: bf16[32,192], index: 1, kind: input, shape index: {}]   ;;  %s2410_s2 = inlined_call_operand.hbm [shape: bf16[64,512], index: 2, kind: input, shape index: {}]   ;;  %s2411_s3 = inlined_call_operand.hbm [shape: bf16[4,16,32], index: 3, kind: input, shape index: {}]   ;;  %s2412_s4 = inlined_call_operand.vmem [shape: f32[1,32], index: 4, kind: input, shape index: {}]   ;;  %s2413_s5 = inlined_call_operand.vmem [shape: f32[8,8], index: 5, kind: input, shape index: {}]   ;;  %s2414_s6 = inlined_call_operand.hbm [shape: f32[2,8,32], index: 6, kind: output, shape index: {}]  }
   0x1   :  { %2419 = sst [smem:[#allocation15_spill]] %s2409_s1 }
   0x2   :  { %11 = vsyncpa [#allocation3], 0 }
   0x3   :  { %13 = vsyncpa [#allocation3 + $0x1], 0 }
   0x4   :  { %14 = vsyncpa [#allocation6], 0 }
   0x5   :  { %15 = vsyncpa [#allocation9], 0 }
   0x6   :  { %16 = vsyncpa [#allocation4], 0 }
   0x7   :  { %18 = vsyncpa [#allocation4 + $0x1], 0  ;;  %s2033_s21 = smov 0   ;;  %s2035_s22 = smov 0  }
   0x8   :  { %s2037_s23 = smov 0   ;;  %s2039_s24 = smov 0  }
   0x9 LB: > { %s2054_s25 = sadd.s32 4294967295, %s1967_s24   ;;  %s1484_s26 = sadd.s32 4294967294, %s1967_s24   ;;  %s1967_s24 = sphi %s2039_s24, %s2440_s24   ;;  %s1963_s23 = sphi %s2037_s23, %s2439_s23   ;;  %s1959_s22 = sphi %s2035_s22, %s2438_s22   ;;  %s1955_s21 = sphi %s2033_s21, %s2437_s21  }
   0xa   : > { %p44_p0 = scmp.ne.s32.totalorder %s1959_s22, %s1955_s21  ;;  %p2415_p1 = scmp.eq.s32.totalorder %s2054_s25, 0 }
   0xb   : > { %p179_p3 = scmp.eq.s32.totalorder %s1484_s26, 1  ;;  %p1485_p5 = scmp.ge.s32.totalorder %s1967_s24, 1 }
   0xc   : > { %p2063_p4 = por %p2415_p1, %p44_p0  ;;  %p186_p7 = scmp.lt.s32.totalorder %s1967_s24, 3 }
   0xd   : > { %p2068_p6 = por %p179_p3, %p44_p0  ;;  %s1969_s30 = smov [#allocation5]  }
   0xe   : > { %s2420_s27 = scalar_select %p2063_p4, 1, 0 }
   0xf   : > { %s2421_s28 = scalar_select %p2068_p6, 1, 0 }
  0x10   : > { %p2073_p8 = pnand %p1485_p5, %p186_p7  ;;  %s198_s7 = sshll.u32 %s1969_s30, 4  ;;  %s199_s7 = int_to_ptr.vmem [resolvable:$true] %s198_s7 }
  0x11   : > { %s1970_s9 = smov [#allocation7]   ;;  %s1800_s11 = scalar_lea.vmem %s199_s7, 512 }
  0x12   : > { %s2422_s29 = scalar_select %p2073_p8, 1, 0 }
  0x13   : > { %p1654_p9 = pneg %p2073_p8  ;;  %s211_s10 = sshll.u32 %s1970_s9, 4  ;;  %s212_s10 = int_to_ptr.vmem [resolvable:$true] %s211_s10 }
  0x14   : > { %p1801_p13 = scmp.ne.s32.totalorder %s199_s7, %s1800_s11  ;;  %p1808_p5 = scmp.lt.s32.totalorder %s199_s7, %s199_s7 }
  0x15   : > { %p2082_p11 = pnand %p1654_p9, %p2415_p1  ;;  %p1809_p7 = scmp.lt.s32.totalorder %s1800_s11, %s1800_s11 }
  0x17   : > { %p1791_p12 = pneg %p2082_p11  ;;  %p1810_p10 = por %p1809_p7, %p1808_p5 }
  0x19   : > { %p1803_p0 = pnand %p1801_p13, %p1791_p12 }
  0x1b   : > { %p1804_p3 = pneg %p1803_p0 }
  0x1d   : > { %p1811_p9 = pnand %p1810_p10, %p1804_p3 }
  0x1f   : > { %1814 = shalt.err (!%p1811_p9)
}
  0x20   : > { %s1971_s12 = smov 128   ;;  %s1972_s13 = smov 8  }
  0x21   : > { %s2424_s1 = sld [smem:[#allocation15_spill]]  ;;  %s1826_s16 = scalar_lea.vmem %s212_s10, 2048 }
  0x22   : > { %p1827_p1 = scmp.ne.s32.totalorder %s212_s10, %s1826_s16  ;;  %p1834_p2 = scmp.lt.s32.totalorder %s212_s10, %s212_s10 }
  0x23   : > { %p1835_p6 = scmp.lt.s32.totalorder %s1826_s16, %s1826_s16 }
  0x24   : > { %p1829_p13 = pnand %p1827_p1, %p1791_p12 }
  0x25   : > { %p1836_p5 = por %p1835_p6, %p1834_p2 }
  0x26   : > { %p1830_p0 = pneg %p1829_p13 }
  0x27   : > { %1657 = dma.hbm_to_vmem [thread:$0]  (!%p2082_p11), %s2424_s1, 512, %s199_s7, [#allocation6], %s1971_s12, %s1971_s12, %s1972_s13  }
  0x28   : > { %p1837_p10 = pnand %p1836_p5, %p1830_p0 }
  0x2a   : > { %1840 = shalt.err (!%p1837_p10)
}
  0x2b   : > { %s1973_s17 = smov 256   ;;  %s1974_s18 = smov 16  }
  0x2c   : > { %1660 = dma.hbm_to_vmem [thread:$0]  (!%p2082_p11), %s2410_s2, 2048, %s212_s10, [#allocation6], %s1973_s17, %s1973_s17, %s1974_s18  }
  0x2d   : > { %s1975_s26 = smov [#allocation8]  }
  0x2e   : > { %s224_s30 = sshll.u32 %s1975_s26, 4  ;;  %s225_s30 = int_to_ptr.vmem [resolvable:$true] %s224_s30 }
  0x2f   : > { %s1852_s7 = scalar_lea.vmem %s225_s30, 512  ;;  %p1860_p6 = scmp.lt.s32.totalorder %s225_s30, %s225_s30 }
  0x30   : > { %p1853_p1 = scmp.ne.s32.totalorder %s225_s30, %s1852_s7  ;;  %p1861_p7 = scmp.lt.s32.totalorder %s1852_s7, %s1852_s7 }
  0x32   : > { %p1855_p3 = pnand %p1853_p1, %p1791_p12  ;;  %p1862_p9 = por %p1861_p7, %p1860_p6 }
  0x34   : > { %p1856_p2 = pneg %p1855_p3 }
  0x36   : > { %p1863_p13 = pnand %p1862_p9, %p1856_p2 }
  0x38   : > { %1866 = shalt.err (!%p1863_p13)
}
  0x39   : > { %s1976_s9 = smov 64   ;;  %s1977_s10 = smov 4  }
  0x3a   : > { %1663 = dma.hbm_to_vmem [thread:$0]  (!%p2082_p11), %s2411_s3, 512, %s225_s30, [#allocation9], %s1976_s9, %s1976_s9, %s1977_s10  }
  0x3b   : > { %s2113_s13 = sadd.s32 1, %s1967_s24   ;;  %s31_s15 = sadd.s32 1, %s1963_s23 }
  0x3c   : > { %s28_s14 = ssub.s32 %s1967_s24, %s2113_s13  ;;  %p38_p0 = scmp.ne.s32.totalorder %s1963_s23, %s1959_s22 }
  0x3d   : > { %p29_p12 = scmp.eq.s32.totalorder %s28_s14, 0  ;;  %p39_p5 = scmp.eq.s32.totalorder %s1967_s24, 0 }
  0x3e   : > { %p1675_p10 = scmp.lt.s32.totalorder %s1967_s24, 2  ;;  %p2425_p3 = scmp.eq.s32.totalorder %s2054_s25, 1 }
  0x3f   : > { %s2123_s16 = scalar_select %p29_p12, %s1963_s23, %s31_s15  }
  0x40   : > { %p40_p1 = por %p39_p5, %p38_p0  ;;  %p2127_p2 = por %p2425_p3, %p38_p0 }
  0x41   : > { %s244_s8 = sand.u32 1, %s1963_s23   ;;  %s1491_s18 = sshll.u32 %s1967_s24, 6 }
  0x42   : > { %s2426_s17 = scalar_select %p2127_p2, 1, 0 }
  0x43   : > { %s1490_s19 = sshll.u32 %s244_s8, 2  ;;  %s2136_s30 = scalar_lea.hbm %s2408_s0, %s1491_s18 }
  0x44   : > { %s248_s7 = scalar_lea.vmem [#allocation2], %s1490_s19  ;;  %p2138_p11 = pnand %p1675_p10, %p40_p1 }
  0x45   : > { %s255_s9 = sshll.u32 %s248_s7, 4  ;;  %s245_s11 = scalar_lea.sflag [#allocation3], %s244_s8  ;;  %s256_s9 = int_to_ptr.vmem [resolvable:$true] %s255_s9 }
  0x46   : > { %s1867_s12 = scalar_lea.hbm %s2136_s30, 64  ;;  %p1869_p7 = pneg %p2138_p11 }
  0x47   : > { %p1868_p6 = scmp.ne.s32.totalorder %s2136_s30, %s1867_s12  ;;  %s1872_s18 = scalar_lea.hbm %s2408_s0, 128 }
  0x48   : > { %p1873_p12 = scmp.lt.s32.totalorder %s2136_s30, %s2408_s0  ;;  %p1874_p0 = scmp.lt.s32.totalorder %s1872_s18, %s1867_s12 }
  0x49   : > { %p1870_p9 = pnand %p1869_p7, %p1868_p6 }
  0x4a   : > { %p1875_p5 = por %p1874_p0, %p1873_p12 }
  0x4b   : > { %p1871_p13 = pneg %p1870_p9 }
  0x4d   : > { %p1876_p10 = pnand %p1875_p5, %p1871_p13 }
  0x4f   : > { %1879 = shalt.err (!%p1876_p10)
}
  0x50   : > { %s1880_s26 = scalar_lea.vmem %s256_s9, 64  ;;  %s1978_s8 = smov [#allocation2]  }
  0x51   : > { %p1881_p1 = scmp.ne.s32.totalorder %s256_s9, %s1880_s26  ;;  %s1885_s7 = sshll.u32 %s1978_s8, 4  ;;  %s1886_s7 = int_to_ptr.vmem [resolvable:$false] %s1885_s7 }
  0x52   : > { %s1887_s1 = scalar_lea.vmem %s1886_s7, 128  ;;  %p1888_p6 = scmp.lt.s32.totalorder %s256_s9, %s1886_s7 }
  0x53   : > { %p1883_p3 = pnand %p1881_p1, %p1869_p7  ;;  %p1889_p9 = scmp.lt.s32.totalorder %s1887_s1, %s1880_s26 }
  0x55   : > { %p1884_p2 = pneg %p1883_p3  ;;  %p1890_p4 = por %p1889_p9, %p1888_p6 }
  0x57   : > { %p1891_p8 = pnand %p1890_p4, %p1884_p2 }
  0x59   : > { %1894 = shalt.err (!%p1891_p8)
}
  0x5a   : > { %1667 = dma.hbm_to_vmem [thread:$0]  (!%p2138_p11), %s2136_s30, 64, %s256_s9, %s245_s11  }
  0x5b   : > { %p2428_p13 = scmp.ne.s32.totalorder %s2422_s29, 0 }
  0x5c   : > { %s2159_s12 = sand.u32 (!%p2428_p13), 1, %s1959_s22   ;;  %p2429_p7 = scmp.ne.s32.totalorder (!%p2428_p13), %s2420_s27, 0 }
  0x5d   : > { %264 = sbr.rel (%p2428_p13) target bundleno = 2717 (0xa9d), region = 44  ;;  %s1493_s14 = sshll.u32 (!%p2428_p13), %s2159_s12, 2 }
  0x5e   : > { %s267_s15 = scalar_lea.sflag (!%p2428_p13), [#allocation3], %s2159_s12  ;;  %s270_s18 = scalar_lea.vmem (!%p2428_p13), [#allocation2], %s1493_s14 }
  0x62   : > { %1938 = dma.done.wait (%p2429_p7), %s267_s15, 64  }
  0x63   : > { %1940 = vsyncadd (%p2429_p7), %s267_s15, 4294967232  ;;  %p2430_p4 = scmp.eq.s32.totalorder %s2054_s25, 0 }
  0x65   : > { %1942 = dma.done.wait (%p2430_p4), [#allocation6], 2560   ;;  %p2431_p8 = pmov %p2430_p4 }
  0x66   : > { %p2432_p2 = pmov %p2430_p4 }
  0x67   : > { %1944 = vsyncadd (%p2431_p8), [#allocation6], 4294964736 }
  0x68   : > { %1946 = dma.done.wait (%p2432_p2), [#allocation9], 512   ;;  %p2433_p11 = pmov %p2432_p2 }
  0x69   : > { %v1979_v0 = vmov 0   ;;  %v1739_v1 = vld [vmem:[#allocation5 + $0x14] ss:$8 sps:$4 sm:$0xff]   ;;  %v1741_v2 = vld [vmem:[#allocation5 + $0x10] ss:$8 sps:$4 sm:$0xff]   ;;  %vm337_vm0 = vcmask 261120  }
  0x6a   : > { %1948 = vsyncadd (%p2433_p11), [#allocation9], 4294966784  ;;  %373 = vmatprep.mubr.bf16.mxu0 %v1979_v0  ;;  %516 = vmatprep.mubr.bf16.mxu1 %v1979_v0  ;;  %v1742_v3 = vld [vmem:[#allocation5 + $0x4] ss:$8 sps:$4 sm:$0xff]   ;;  %v1744_v4 = vld [vmem:[#allocation5] ss:$8 sps:$4 sm:$0xff]  }
  0x6b   : > { %353 = vmatprep.subr.bf16.mxu0 %v1739_v1  ;;  %v1745_v5 = vld [vmem:[#allocation7 + $0x64] ss:$16 sps:$4 sm:$0xff]   ;;  %v312_v6 = vld [vmem:[%s270_s18] sm:$0xf]  ;;  %v1750_v8 = vld [vmem:[#allocation7 + $0x60] ss:$16 sps:$4 sm:$0xff]  }
  0x6c   : > { %354 = vmatpush1.bf16.msra.mxu0 %v1741_v2  ;;  %492 = vmatprep.subr.bf16.mxu1 %v1745_v5  ;;  %v1749_v7 = vld [vmem:[#allocation7 + $0x6c] ss:$16 sps:$4 sm:$0xff]   ;;  %v1751_v9 = vld [vmem:[#allocation7 + $0x44] ss:$16 sps:$4 sm:$0xff]   ;;  %v1747_v10 = vld [vmem:[#allocation7 + $0x68] ss:$16 sps:$4 sm:$0xff]  }
  0x6d   : > { %355 = vmatprep.subr.bf16.mxu0 %v1742_v3  ;;  %493 = vmatpush1.bf16.msra.mxu1 %v1750_v8  ;;  %v1755_v11 = vld [vmem:[#allocation7 + $0x4c] ss:$16 sps:$4 sm:$0xff]   ;;  %v1756_v12 = vld [vmem:[#allocation7 + $0x40] ss:$16 sps:$4 sm:$0xff]   ;;  %v1757_v13 = vld [vmem:[#allocation7 + $0x24] ss:$16 sps:$4 sm:$0xff]  }
  0x6e   : > { %494 = vmatprep.subr.bf16.mxu1 %v1751_v9  ;;  %v1753_v14 = vld [vmem:[#allocation7 + $0x48] ss:$16 sps:$4 sm:$0xff]   ;;  %v1761_v15 = vld [vmem:[#allocation7 + $0x2c] ss:$16 sps:$4 sm:$0xff]   ;;  %v1762_v16 = vld [vmem:[#allocation7 + $0x20] ss:$16 sps:$4 sm:$0xff]  }
  0x6f   : > { %v1763_v17 = vld [vmem:[#allocation7 + $0x4] ss:$16 sps:$4 sm:$0xff]   ;;  %v1759_v18 = vld [vmem:[#allocation7 + $0x28] ss:$16 sps:$4 sm:$0xff]   ;;  %v1767_v19 = vld [vmem:[#allocation7 + $0xc] ss:$16 sps:$4 sm:$0xff]  }
  0x70   : > { %356 = vmatpush1.bf16.msra.mxu0 %v1744_v4  ;;  %v1765_v20 = vld [vmem:[#allocation7 + $0x8] ss:$16 sps:$4 sm:$0xff]   ;;  %v1768_v21 = vld [vmem:[#allocation7] ss:$16 sps:$4 sm:$0xff]   ;;  %v1980_v22 = vmov 0.0   ;;  %vm480_vm1 = vcmask 523264  }
  0x71   : > { %533 = vmatprep.subr.bf16.mxu0 %v1749_v7  ;;  %495 = vmatpush1.bf16.msra.mxu1 %v1756_v12  ;;  %vm596_vm2 = vcmask 1043456   ;;  %s1981_s1 = smov 112   ;;  %s1982_s27 = smov 64   ;;  %vm1983_vm3 = vmmov 0   ;;  %vm611_vm4 = vcmask 130048   ;;  %vm590_vm5 = vcmask 1040384  }
  0x72   : > { %496 = vmatprep.subr.bf16.mxu1 %v1757_v13  ;;  %s1984_s29 = smov 48   ;;  %s1985_s30 = smov 2   ;;  %vm592_vm6 = vcmask 1041408   ;;  %vm594_vm7 = vcmask 1042432   ;;  %vm598_vm8 = vcmask 1044480   ;;  %vm600_vm9 = vcmask 1045504  }
  0x73   : > { %1502 = vmatmul.mubr.msk.bf16.vlgmr.msra.gmra.mxu0 %vm337_vm0, %v312_v6  ;;  %s1986_s9 = smov 1   ;;  %s1987_s10 = smov 4   ;;  %vm602_vm10 = vcmask 1046528   ;;  %vm658_vm11 = vcmask 64512  }
  0x74   : > { %534 = vmatpush1.bf16.msra.mxu0 %v1747_v10  ;;  %557 = vmatprep.mubr.bf16.mxu0 %v1979_v0  ;;  %s1988_s11 = smov 3   ;;  %s1989_s20 = smov 6  }
  0x75   : > { %535 = vmatprep.subr.bf16.mxu0 %v1755_v11  ;;  %497 = vmatpush1.bf16.msra.mxu1 %v1762_v16  ;;  %s1990_s19 = smov 5   ;;  %s1991_s26 = smov 7   ;;  %v2243_v16 = vld [vmem:[%s2413_s5] sm:$0xff] }
  0x76   : > { %498 = vmatprep.subr.bf16.mxu1 %v1763_v17  ;;  %s1992_s8 = smov 113   ;;  %s1993_s15 = smov 32  }
  0x77   : > { %s1994_s18 = smov 96   ;;  %p2434_p0 = scmp.ne.s32.totalorder %s2426_s17, 0 }
  0x78   : > { %536 = vmatpush1.bf16.msra.mxu0 %v1753_v14  ;;  %s1997_s14 = smov [#allocation10]  }
  0x79   : > { %537 = vmatprep.subr.bf16.mxu0 %v1761_v15  ;;  %499 = vmatpush1.bf16.msra.mxu1 %v1768_v21 }
  0x7a   : > { %1566 = vmatprep.subr.bf16.mxu1 %v1980_v22 }
  0x7c   : > { %538 = vmatpush1.bf16.msra.mxu0 %v1759_v18 }
  0x7d   : > { %539 = vmatprep.subr.bf16.mxu0 %v1767_v19 }
  0x80   : > { %540 = vmatpush1.bf16.msra.mxu0 %v1765_v20 }
  0x81   : > { %1572 = vmatprep.subr.bf16.mxu0 %v1980_v22 }
 0x133   : > { %v375_v23 = vpop.f32.mrf.mxu0 }
 0x134   : > { %v2178_v24 = vpack.c.bf16 %v375_v23, %v375_v23 }
 0x135   : > { %v377_v25 = vpop.f32.mrf.mxu0 }
 0x136   : > { %v2180_v26 = vpack.c.bf16 %v377_v25, %v377_v25  ;;  %749 = vrot.lane.b32.xlu1 %v2178_v24, %s1981_s1  ;;  %605 = vrot.lane.b32.xlu0 %v2178_v24, %s1982_s27  ;;  %s1996_s27 = smov 16  }
 0x137   : > { %1519 = vmatmul.mubr.msk.bf16.vlgmr.msra.gmra.mxu1 %vm480_vm1, %v2178_v24  ;;  %1520 = vmatmul.mubr.msk.bf16.vlgmr.msra.gmra.mxu0 %vm480_vm1, %v2178_v24  ;;  %v379_v27 = vpop.f32.mrf.mxu0 }
 0x138   : > { %v675_v28 = vsel %vm596_vm2, %v2180_v26, 0  ;;  %1568 = vmatprep.mubr.msk.bf16.mxu1 %vm1983_vm3, %v1980_v22  ;;  %1574 = vmatprep.mubr.msk.bf16.mxu0 %vm1983_vm3, %v1980_v22 }
 0x139   : > { %v380_v29 = vpop.f32.mrf.mxu0  ;;  %1573 = vmatpush3.bf16.msra.mxu0 %v675_v28 }
 0x13a   : > { %751 = vrot.lane.b32.xlu0 %v2178_v24, %s1984_s29  ;;  %1584 = vmatprep.subr.bf16.mxu0 %v1980_v22  ;;  %s1497_s29 = sshll.u32 %s2159_s12, 3 }
 0x1a8   : > { %v606_v30 = vpop.permute.xlu0 %605  ;;  %v750_v34 = vpop.permute.xlu1 %749 }
 0x1a9   : > { %v615_v31 = vsel %vm611_vm4, %v606_v30, 0 }
 0x1aa   : > { %1567 = vmatpush3.bf16.xpose.msra.mxu1 %v615_v31 }
 0x1ab   : > { %1578 = vmatprep.subr.bf16.mxu1 %v1980_v22 }
 0x1ac   : > { %v752_v32 = vpop.permute.xlu0 %751 }
 0x1ad   : > { %v761_v33 = vsel %vm611_vm4, %v752_v32, 0 }
 0x1b1   : > { %1569 = vmatmul.mubr.msk.bf16.vlgmr.msra.gmra.mxu1 %vm611_vm4, %v2178_v24 }
 0x1b2   : > { %1579 = vmatpush3.bf16.xpose.msra.mxu1 %v761_v33  ;;  %1580 = vmatprep.mubr.msk.bf16.mxu1 %vm1983_vm3, %v1980_v22 }
 0x1b3   : > { %1590 = vmatprep.subr.bf16.mxu1 %v1980_v22 }
 0x1b9   : > { %1581 = vmatmul.mubr.msk.bf16.vlgmr.msra.gmra.mxu1 %vm611_vm4, %v750_v34 }
 0x1ba   : > { %1592 = vmatprep.mubr.msk.bf16.mxu1 %vm1983_vm3, %v1980_v22 }
 0x1f7   : > { %v518_v35 = vpop.f32.mrf.mxu1  ;;  %v2206_v36 = vpop.f32.mrf.mxu0 }
 0x1f8   : > { %572 = vrot.lane.b32.xlu0 %v518_v35, %s1985_s30  ;;  %569 = vrot.lane.b32.xlu1 %v518_v35, %s1986_s9 }
 0x1f9   : > { %v520_v37 = vpop.f32.mrf.mxu1  ;;  %v2210_v38 = vpop.f32.mrf.mxu0 }
 0x1fb   : > { %v522_v39 = vpop.f32.mrf.mxu1  ;;  %v563_v40 = vpop.f32.mrf.mxu0 }
 0x1fc   : > { %578 = vrot.lane.b32.xlu0 %v518_v35, %s1987_s10  ;;  %575 = vrot.lane.b32.xlu1 %v518_v35, %s1988_s11 }
 0x1fd   : > { %v523_v41 = vpop.f32.mrf.mxu1  ;;  %v564_v42 = vpop.f32.mrf.mxu0 }
 0x200   : > { %584 = vrot.lane.b32.xlu0 %v518_v35, %s1989_s20  ;;  %581 = vrot.lane.b32.xlu1 %v518_v35, %s1990_s19 }
 0x204   : > { %587 = vrot.lane.b32.xlu1 %v518_v35, %s1991_s26  ;;  %721 = vrot.lane.b32.xlu0 %v520_v37, %s1986_s9 }
 0x208   : > { %724 = vrot.lane.b32.xlu1 %v520_v37, %s1985_s30  ;;  %727 = vrot.lane.b32.xlu0 %v520_v37, %s1988_s11 }
 0x20c   : > { %730 = vrot.lane.b32.xlu1 %v520_v37, %s1987_s10  ;;  %733 = vrot.lane.b32.xlu0 %v520_v37, %s1990_s19 }
 0x210   : > { %736 = vrot.lane.b32.xlu1 %v520_v37, %s1989_s20  ;;  %739 = vrot.lane.b32.xlu0 %v520_v37, %s1991_s26 }
 0x26a   : > { %v573_v43 = vpop.permute.xlu0 %572  ;;  %v570_v44 = vpop.permute.xlu1 %569 }
 0x26b   : > { %v591_v45 = vsel %vm590_vm5, %v518_v35, %v570_v44 }
 0x26c   : > { %v593_v47 = vsel %vm592_vm6, %v591_v45, %v573_v43 }
 0x26e   : > { %v579_v46 = vpop.permute.xlu0 %578  ;;  %v576_v48 = vpop.permute.xlu1 %575 }
 0x26f   : > { %v595_v49 = vsel %vm594_vm7, %v593_v47, %v576_v48 }
 0x270   : > { %v597_v52 = vsel %vm596_vm2, %v595_v49, %v579_v46 }
 0x271   : > { %v651_v50 = vpop.f32.mrf.mxu1 }
 0x272   : > { %v585_v51 = vpop.permute.xlu0 %584  ;;  %v582_v53 = vpop.permute.xlu1 %581 }
 0x273   : > { %v599_v54 = vsel %vm598_vm8, %v597_v52, %v582_v53  ;;  %v1570_v55 = vpop.f32.mrf.mxu1 }
 0x274   : > { %v601_v59 = vsel %vm600_vm9, %v599_v54, %v585_v51 }
 0x275   : > { %v654_v56 = vpop.f32.mrf.mxu1 }
 0x276   : > { %v588_v57 = vpop.permute.xlu1 %587  ;;  %v722_v58 = vpop.permute.xlu0 %721 }
 0x277   : > { %v603_v60 = vsel %vm602_vm10, %v601_v59, %v588_v57  ;;  %v1571_v61 = vpop.f32.mrf.mxu1  ;;  %v742_v63 = vsel %vm590_vm5, %v520_v37, %v722_v58 }
 0x278   : > { %608 = vrot.lane.b32.xlu1 %v603_v60, %s1992_s8 }
 0x279   : > { %v797_v62 = vpop.f32.mrf.mxu1 }
 0x27a   : > { %v725_v0 = vpop.permute.xlu1 %724  ;;  %v728_v1 = vpop.permute.xlu0 %727 }
 0x27b   : > { %v743_v2 = vsel %vm592_vm6, %v742_v63, %v725_v0  ;;  %v1582_v3 = vpop.f32.mrf.mxu1  ;;  %v1769_v0 = vld [vmem:[#allocation8] sm:$0xff]  }
 0x27c   : > { %v744_v5 = vsel %vm594_vm7, %v743_v2, %v728_v1  ;;  %v1770_v1 = vld [vmem:[#allocation8 + $0x8] sm:$0xff]  }
 0x27d   : > { %v800_v4 = vpop.f32.mrf.mxu1  ;;  %1591 = vmatpush3.bf16.msra.mxu1 %v1770_v1 }
 0x27e   : > { %v731_v6 = vpop.permute.xlu1 %730  ;;  %v734_v7 = vpop.permute.xlu0 %733  ;;  %1602 = vmatprep.subr.bf16.mxu1 %v1980_v22 }
 0x27f   : > { %v745_v8 = vsel %vm596_vm2, %v744_v5, %v731_v6  ;;  %v1583_v9 = vpop.f32.mrf.mxu1 }
 0x280   : > { %v746_v10 = vsel %vm598_vm8, %v745_v8, %v734_v7 }
 0x282   : > { %v737_v11 = vpop.permute.xlu1 %736  ;;  %v740_v12 = vpop.permute.xlu0 %739 }
 0x283   : > { %v747_v13 = vsel %vm600_vm9, %v746_v10, %v737_v11 }
 0x284   : > { %v748_v14 = vsel %vm602_vm10, %v747_v13, %v740_v12 }
 0x285   : > { %754 = vrot.lane.b32.xlu0 %v748_v14, %s1992_s8 }
 0x2ea   : > { %v609_v15 = vpop.permute.xlu1 %608 }
 0x2eb   : > { %v652_v17 = vadd.f32 %v651_v50, %v609_v15 }
 0x2ed   : > { %v657_v18 = vadd.f32 %v652_v17, %v2243_v16 }
 0x2ef   : > { %v659_v19 = vsel %vm658_vm11, %v657_v18, -inf }
 0x2f0   : > { %660 = vmax.xlane.f32.xlu1 %v659_v19 }
 0x2f7   : > { %v755_v20 = vpop.permute.xlu0 %754 }
 0x2f8   : > { %v798_v21 = vadd.f32 %v797_v62, %v755_v20 }
 0x2fa   : > { %v803_v23 = vadd.f32 %v798_v21, %v2243_v16 }
 0x2fc   : > { %v804_v25 = vsel %vm658_vm11, %v803_v23, -inf }
 0x2fd   : > { %805 = vmax.xlane.f32.xlu0 %v804_v25 }
 0x379   : > { %v661_v27 = vpop.xlane.xlu1 %660 }
 0x37a   : > { %v662_v28 = vsub.f32 %v657_v18, %v661_v27 }
 0x37c   : > { %v663_v29 = vmul.f32 1.442695, %v662_v28 }
 0x37e   : > { %1773 = vpow2.f32 %v663_v29 }
 0x386   : > { %v806_v30 = vpop.xlane.xlu0 %805 }
 0x387   : > { %v807_v31 = vsub.f32 %v803_v23, %v806_v30 }
 0x389   : > { %v808_v32 = vmul.f32 1.442695, %v807_v31 }
 0x38b   : > { %v1774_v33 = vpop.eup %1773  ;;  %1775 = vpow2.f32 %v808_v32 }
 0x38c   : > { %v665_v34 = vsel %vm658_vm11, %v1774_v33, 0.0 }
 0x38d   : > { %666 = vadd.xlane.f32.xlu0 %v665_v34 }
 0x398   : > { %v1776_v35 = vpop.eup %1775 }
 0x399   : > { %v810_v37 = vsel %vm658_vm11, %v1776_v35, 0.0 }
 0x39a   : > { %811 = vadd.xlane.f32.xlu1 %v810_v37 }
 0x3a3   : > { %817 = vrot.lane.b32.xlu0 %v2180_v26, %s1981_s1  ;;  %s1995_s1 = smov 80  }
 0x3a7   : > { %968 = vrot.lane.b32.xlu0 %v2206_v36, %s1986_s9 }
 0x3ab   : > { %998 = vrot.lane.b32.xlu1 %v2178_v24, %s1993_s15  ;;  %974 = vrot.lane.b32.xlu0 %v2206_v36, %s1988_s11  ;;  %s1899_s15 = sshll.u32 %s1997_s14, 4  ;;  %s1900_s15 = int_to_ptr.vmem [resolvable:$false] %s1899_s15 }
 0x3af   : > { %996 = vrot.lane.b32.xlu1 %v2178_v24, %s1994_s18  ;;  %980 = vrot.lane.b32.xlu0 %v2206_v36, %s1990_s19 }
 0x3b3   : > { %971 = vrot.lane.b32.xlu1 %v2206_v36, %s1985_s30  ;;  %986 = vrot.lane.b32.xlu0 %v2206_v36, %s1991_s26 }
 0x3b7   : > { %977 = vrot.lane.b32.xlu1 %v2206_v36, %s1987_s10 }
 0x3bb   : > { %983 = vrot.lane.b32.xlu1 %v2206_v36, %s1989_s20 }
 0x416   : > { %v667_v39 = vpop.xlane.xlu0 %666 }
 0x417   : > { %1777 = vrcp.f32 %v667_v39 }
 0x41a   : > { %v818_v40 = vpop.permute.xlu0 %817 }
 0x41b   : > { %v823_v47 = vsel %vm596_vm2, %v818_v40, 0 }
 0x41e   : > { %v969_v44 = vpop.permute.xlu0 %968 }
 0x41f   : > { %v989_v50 = vsel %vm590_vm5, %v2206_v36, %v969_v44 }
 0x422   : > { %v975_v49 = vpop.permute.xlu0 %974 }
 0x423   : > { %v812_v41 = vpop.xlane.xlu1 %811 }
 0x424   : > { %v1778_v42 = vpop.eup %1777  ;;  %1779 = vrcp.f32 %v812_v41 }
 0x425   : > { %v669_v43 = vmul.f32 %v1778_v42, %v1774_v33 }
 0x426   : > { %v981_v54 = vpop.permute.xlu0 %980 }
 0x427   : > { %v999_v45 = vpop.permute.xlu1 %998  ;;  %v670_v46 = vpack.c.bf16 %v669_v43, %v669_v43 }
 0x428   : > { %v1008_v10 = vsel %vm611_vm4, %v999_v45, 0 }
 0x429   : > { %1575 = vmatmul.mubr.msk.bf16.vlgmr.msra.gmra.mxu0 %vm658_vm11, %v670_v46 }
 0x42a   : > { %1585 = vmatpush3.bf16.msra.mxu0 %v823_v47  ;;  %1586 = vmatprep.mubr.msk.bf16.mxu0 %vm1983_vm3, %v1980_v22  ;;  %v987_v36 = vpop.permute.xlu0 %986 }
 0x42b   : > { %v997_v48 = vpop.permute.xlu1 %996  ;;  %1596 = vmatprep.subr.bf16.mxu0 %v1980_v22 }
 0x42f   : > { %v972_v51 = vpop.permute.xlu1 %971 }
 0x430   : > { %v990_v52 = vsel %vm592_vm6, %v989_v50, %v972_v51 }
 0x431   : > { %v1780_v53 = vpop.eup %1779  ;;  %v991_v57 = vsel %vm594_vm7, %v990_v52, %v975_v49 }
 0x432   : > { %v814_v55 = vmul.f32 %v1780_v53, %v1776_v35 }
 0x433   : > { %v978_v56 = vpop.permute.xlu1 %977 }
 0x434   : > { %v992_v58 = vsel %vm596_vm2, %v991_v57, %v978_v56  ;;  %v815_v59 = vpack.c.bf16 %v814_v55, %v814_v55 }
 0x435   : > { %v993_v61 = vsel %vm598_vm8, %v992_v58, %v981_v54 }
 0x436   : > { %1587 = vmatmul.mubr.msk.bf16.vlgmr.msra.gmra.mxu0 %vm658_vm11, %v815_v59 }
 0x437   : > { %v984_v60 = vpop.permute.xlu1 %983  ;;  %1598 = vmatprep.mubr.msk.bf16.mxu0 %vm1983_vm3, %v1980_v22  ;;  %1597 = vmatpush3.bf16.msra.mxu0 %v1769_v0 }
 0x438   : > { %v994_v62 = vsel %vm600_vm9, %v993_v61, %v984_v60  ;;  %1608 = vmatprep.subr.bf16.mxu0 %v1980_v22 }
 0x439   : > { %v995_v63 = vsel %vm602_vm10, %v994_v62, %v987_v36  ;;  %v1771_v36 = vld [vmem:[#allocation8 + $0x10] sm:$0xff]  }
 0x43a   : > { %1001 = vrot.lane.b32.xlu1 %v995_v63, %s1992_s8 }
 0x4ac   : > { %v1002_v25 = vpop.permute.xlu1 %1001 }
 0x4e9   : > { %v711_v2 = vpop.f32.mrf.mxu0 }
 0x4ea   : > { %v717_v3 = vpack.c.bf16 %v711_v2, %v711_v2 }
 0x4eb   : > { %v1576_v4 = vpop.f32.mrf.mxu0 }
 0x4ec   : > { %1599 = vmatmul.mubr.msk.bf16.vlgmr.msra.gmra.mxu0 %vm611_vm4, %v717_v3 }
 0x4ed   : > { %v714_v5 = vpop.f32.mrf.mxu0  ;;  %1610 = vmatprep.mubr.msk.bf16.mxu0 %vm1983_vm3, %v1980_v22 }
 0x4ef   : > { %v1577_v6 = vpop.f32.mrf.mxu0 }
 0x4f6   : > { %v859_v7 = vpop.f32.mrf.mxu0 }
 0x4f7   : > { %v865_v8 = vpack.c.bf16 %v859_v7, %v859_v7 }
 0x4f8   : > { %v1588_v9 = vpop.f32.mrf.mxu0 }
 0x4f9   : > { %1593 = vmatmul.mubr.msk.bf16.vlgmr.msra.gmra.mxu1 %vm611_vm4, %v865_v8 }
 0x4fa   : > { %1603 = vmatpush3.bf16.xpose.msra.mxu1 %v1008_v10  ;;  %v862_v11 = vpop.f32.mrf.mxu0  ;;  %1604 = vmatprep.mubr.msk.bf16.mxu1 %vm1983_vm3, %v1980_v22 }
 0x4fb   : > { %1614 = vmatprep.subr.bf16.mxu1 %v1980_v22 }
 0x4fc   : > { %v1589_v12 = vpop.f32.mrf.mxu0 }
 0x501   : > { %1605 = vmatmul.mubr.msk.bf16.vlgmr.msra.gmra.mxu1 %vm611_vm4, %v997_v48 }
 0x502   : > { %1616 = vmatprep.mubr.msk.bf16.mxu1 %vm1983_vm3, %v1980_v22  ;;  %1615 = vmatpush3.bf16.msra.mxu1 %v1771_v36 }
 0x503   : > { %1626 = vmatprep.subr.bf16.mxu1 %v1980_v22 }
 0x5ac   : > { %v961_v13 = vpop.f32.mrf.mxu0 }
 0x5ae   : > { %v1600_v14 = vpop.f32.mrf.mxu0 }
 0x5b0   : > { %v964_v15 = vpop.f32.mrf.mxu0 }
 0x5b2   : > { %v1601_v17 = vpop.f32.mrf.mxu0 }
 0x5b9   : > { %v912_v18 = vpop.f32.mrf.mxu1 }
 0x5ba   : > { %v2300_v19 = vadd.f32 %v961_v13, %v912_v18 }
 0x5bb   : > { %v1594_v20 = vpop.f32.mrf.mxu1 }
 0x5bc   : > { %v1772_v20 = vld [vmem:[#allocation8 + $0x18] sm:$0xff]  }
 0x5bd   : > { %v915_v21 = vpop.f32.mrf.mxu1 }
 0x5bf   : > { %v1595_v23 = vpop.f32.mrf.mxu1 }
 0x5c1   : > { %v1044_v27 = vpop.f32.mrf.mxu1 }
 0x5c2   : > { %v1045_v28 = vadd.f32 %v1044_v27, %v1002_v25 }
 0x5c3   : > { %v1606_v29 = vpop.f32.mrf.mxu1 }
 0x5c4   : > { %v1050_v30 = vadd.f32 %v1045_v28, %v2243_v16 }
 0x5c5   : > { %v1047_v31 = vpop.f32.mrf.mxu1 }
 0x5c6   : > { %v1051_v32 = vsel %vm658_vm11, %v1050_v30, -inf }
 0x5c7   : > { %1052 = vmax.xlane.f32.xlu0 %v1051_v32  ;;  %v1607_v33 = vpop.f32.mrf.mxu1 }
 0x5dd   : > { %1063 = vrot.lane.b32.xlu0 %v2180_v26, %s1994_s18  ;;  %s1901_s18 = scalar_lea.vmem %s1900_s15, 256 }
 0x5e1   : > { %1194 = vrot.lane.b32.xlu0 %v2178_v24, %s1995_s1 }
 0x5e5   : > { %1169 = vrot.lane.b32.xlu0 %v2210_v38, %s1985_s30 }
 0x5e9   : > { %1175 = vrot.lane.b32.xlu0 %v2210_v38, %s1987_s10  ;;  %s1539_s10 = sshll.u32 %s2054_s25, 7  ;;  %s1372_s25 = scalar_lea.sflag [#allocation4], %s2159_s12 }
 0x5ed   : > { %1181 = vrot.lane.b32.xlu0 %v2210_v38, %s1989_s20 }
 0x650   : > { %v1053_v34 = vpop.xlane.xlu0 %1052 }
 0x651   : > { %v1054_v35 = vsub.f32 %v1050_v30, %v1053_v34  ;;  %v1537_v34 = vld [vmem:[%s2412_s4] ss:$0 sm:$0xff] }
 0x653   : > { %v1055_v37 = vmul.f32 1.442695, %v1054_v35 }
 0x654   : > { %v1064_v39 = vpop.permute.xlu0 %1063 }
 0x655   : > { %1781 = vpow2.f32 %v1055_v37  ;;  %v1069_v40 = vsel %vm596_vm2, %v1064_v39, 0 }
 0x656   : > { %1609 = vmatpush3.bf16.msra.mxu0 %v1069_v40 }
 0x657   : > { %1620 = vmatprep.subr.bf16.mxu0 %v1980_v22 }
 0x658   : > { %v1195_v44 = vpop.permute.xlu0 %1194 }
 0x65c   : > { %v1170_v46 = vpop.permute.xlu0 %1169 }
 0x660   : > { %v1176_v50 = vpop.permute.xlu0 %1175 }
 0x662   : > { %v1782_v41 = vpop.eup %1781 }
 0x663   : > { %v1057_v42 = vsel %vm658_vm11, %v1782_v41, 0.0 }
 0x664   : > { %1058 = vadd.xlane.f32.xlu1 %v1057_v42  ;;  %v1182_v58 = vpop.permute.xlu0 %1181 }
 0x675   : > { %1196 = vrot.lane.b32.xlu1 %v2178_v24, %s1996_s27 }
 0x679   : > { %1166 = vrot.lane.b32.xlu1 %v2210_v38, %s1986_s9 }
 0x67d   : > { %1172 = vrot.lane.b32.xlu1 %v2210_v38, %s1988_s11  ;;  %s310_s11 = scalar_lea.vmem [#allocation10], %s1497_s29 }
 0x67e   : > { %s1385_s20 = sshll.u32 %s310_s11, 4  ;;  %s2366_s20 = int_to_ptr.vmem [resolvable:$true] %s1385_s20 }
 0x67f   : > { %s1895_s7 = scalar_lea.vmem %s2366_s20, 128  ;;  %p1902_p1 = scmp.lt.s32.totalorder %s2366_s20, %s1900_s15 }
 0x680   : > { %p1896_p12 = scmp.ne.s32.totalorder %s2366_s20, %s1895_s7  ;;  %p1903_p3 = scmp.lt.s32.totalorder %s1901_s18, %s1895_s7 }
 0x681   : > { %1178 = vrot.lane.b32.xlu1 %v2210_v38, %s1990_s19 }
 0x682   : > { %p1897_p5 = pnand %p1896_p12, %p2434_p0  ;;  %p1904_p6 = por %p1903_p3, %p1902_p1 }
 0x684   : > { %p1898_p10 = pneg %p1897_p5 }
 0x685   : > { %1184 = vrot.lane.b32.xlu1 %v2210_v38, %s1991_s26 }
 0x686   : > { %p1905_p9 = pnand %p1904_p6, %p1898_p10 }
 0x6ed   : > { %v1059_v43 = vpop.xlane.xlu1 %1058 }
 0x6ee   : > { %1783 = vrcp.f32 %v1059_v43 }
 0x6f1   : > { %v1197_v45 = vpop.permute.xlu1 %1196 }
 0x6f2   : > { %v1206_v59 = vsel %vm611_vm4, %v1197_v45, 0 }
 0x6f5   : > { %v1167_v47 = vpop.permute.xlu1 %1166 }
 0x6f6   : > { %v1187_v24 = vsel %vm590_vm5, %v2210_v38, %v1167_v47 }
 0x6f7   : > { %v1188_v49 = vsel %vm592_vm6, %v1187_v24, %v1170_v46 }
 0x6f9   : > { %v1173_v48 = vpop.permute.xlu1 %1172 }
 0x6fa   : > { %v1189_v51 = vsel %vm594_vm7, %v1188_v49, %v1173_v48 }
 0x6fb   : > { %v1784_v52 = vpop.eup %1783  ;;  %v1190_v55 = vsel %vm596_vm2, %v1189_v51, %v1176_v50 }
 0x6fc   : > { %v1061_v53 = vmul.f32 %v1784_v52, %v1782_v41 }
 0x6fd   : > { %v1179_v54 = vpop.permute.xlu1 %1178 }
 0x6fe   : > { %v1191_v56 = vsel %vm598_vm8, %v1190_v55, %v1179_v54  ;;  %v1062_v57 = vpack.c.bf16 %v1061_v53, %v1061_v53 }
 0x6ff   : > { %v1192_v60 = vsel %vm600_vm9, %v1191_v56, %v1182_v58 }
 0x700   : > { %1611 = vmatmul.mubr.msk.bf16.vlgmr.msra.gmra.mxu0 %vm658_vm11, %v1062_v57 }
 0x701   : > { %1621 = vmatpush3.bf16.xpose.msra.mxu0 %v1206_v59  ;;  %v1185_v38 = vpop.permute.xlu1 %1184  ;;  %1622 = vmatprep.mubr.msk.bf16.mxu0 %vm1983_vm3, %v1980_v22 }
 0x702   : > { %v1193_v61 = vsel %vm602_vm10, %v1192_v60, %v1185_v38  ;;  %1632 = vmatprep.subr.bf16.mxu0 %v1980_v22 }
 0x703   : > { %1199 = vrot.lane.b32.xlu0 %v1193_v61, %s1992_s8  ;;  %s2364_s8 = scalar_lea.hbm %s2414_s6, %s1539_s10 }
 0x708   : > { %1623 = vmatmul.mubr.msk.bf16.vlgmr.msra.gmra.mxu0 %vm611_vm4, %v1195_v44 }
 0x709   : > { %1634 = vmatprep.mubr.msk.bf16.mxu0 %vm1983_vm3, %v1980_v22  ;;  %1633 = vmatpush3.bf16.msra.mxu0 %v1772_v20 }
 0x775   : > { %v1200_v3 = vpop.permute.xlu0 %1199 }
 0x7c0   : > { %v1105_v62 = vpop.f32.mrf.mxu0 }
 0x7c1   : > { %v1111_v63 = vpack.c.bf16 %v1105_v62, %v1105_v62 }
 0x7c2   : > { %v1612_v0 = vpop.f32.mrf.mxu0 }
 0x7c3   : > { %1617 = vmatmul.mubr.msk.bf16.vlgmr.msra.gmra.mxu1 %vm611_vm4, %v1111_v63 }
 0x7c4   : > { %v1108_v1 = vpop.f32.mrf.mxu0  ;;  %1628 = vmatprep.mubr.msk.bf16.mxu1 %vm1983_vm3, %v1980_v22 }
 0x7c6   : > { %v1613_v2 = vpop.f32.mrf.mxu0 }
 0x7c8   : > { %v1242_v4 = vpop.f32.mrf.mxu0 }
 0x7c9   : > { %v1243_v5 = vadd.f32 %v1242_v4, %v1200_v3 }
 0x7ca   : > { %v1624_v6 = vpop.f32.mrf.mxu0 }
 0x7cb   : > { %v1248_v7 = vadd.f32 %v1243_v5, %v2243_v16 }
 0x7cc   : > { %v1245_v8 = vpop.f32.mrf.mxu0 }
 0x7cd   : > { %v1249_v9 = vsel %vm658_vm11, %v1248_v7, -inf }
 0x7ce   : > { %1250 = vmax.xlane.f32.xlu1 %v1249_v9  ;;  %v1625_v10 = vpop.f32.mrf.mxu0 }
 0x857   : > { %v1251_v11 = vpop.xlane.xlu1 %1250 }
 0x858   : > { %v1252_v12 = vsub.f32 %v1248_v7, %v1251_v11 }
 0x85a   : > { %v1253_v13 = vmul.f32 1.442695, %v1252_v12 }
 0x85c   : > { %1785 = vpow2.f32 %v1253_v13 }
 0x869   : > { %v1786_v14 = vpop.eup %1785 }
 0x86a   : > { %v1255_v15 = vsel %vm658_vm11, %v1786_v14, 0.0 }
 0x86b   : > { %1256 = vadd.xlane.f32.xlu0 %v1255_v15 }
 0x881   : > { %1261 = vrot.lane.b32.xlu0 %v2180_v26, %s1995_s1 }
 0x883   : > { %v1158_v22 = vpop.f32.mrf.mxu1 }
 0x884   : > { %v1164_v17 = vadd.f32 %v1158_v22, %v2300_v19 }
 0x885   : > { %v1618_v16 = vpop.f32.mrf.mxu1 }
 0x887   : > { %v1161_v18 = vpop.f32.mrf.mxu1 }
 0x889   : > { %v1619_v21 = vpop.f32.mrf.mxu1 }
 0x8f4   : > { %v1257_v23 = vpop.xlane.xlu0 %1256 }
 0x8f5   : > { %1787 = vrcp.f32 %v1257_v23 }
 0x8f8   : > { %v1262_v25 = vpop.permute.xlu0 %1261 }
 0x8f9   : > { %v1267_v27 = vsel %vm596_vm2, %v1262_v25, 0 }
 0x8fa   : > { %1627 = vmatpush3.bf16.msra.mxu1 %v1267_v27 }
 0x902   : > { %v1788_v28 = vpop.eup %1787 }
 0x903   : > { %v1259_v29 = vmul.f32 %v1788_v28, %v1786_v14 }
 0x905   : > { %v1260_v30 = vpack.c.bf16 %v1259_v29, %v1259_v29 }
 0x907   : > { %1629 = vmatmul.mubr.msk.bf16.vlgmr.msra.gmra.mxu1 %vm658_vm11, %v1260_v30 }
 0x9c7   : > { %v1303_v26 = vpop.f32.mrf.mxu1 }
 0x9c8   : > { %v1309_v19 = vpack.c.bf16 %v1303_v26, %v1303_v26 }
 0x9c9   : > { %v1630_v31 = vpop.f32.mrf.mxu1 }
 0x9ca   : > { %1635 = vmatmul.mubr.msk.bf16.vlgmr.msra.gmra.mxu0 %vm611_vm4, %v1309_v19 }
 0x9cb   : > { %v1306_v32 = vpop.f32.mrf.mxu1 }
 0x9cd   : > { %v1631_v33 = vpop.f32.mrf.mxu1 }
 0xa8a   : > { %v1356_v35 = vpop.f32.mrf.mxu0 }
 0xa8b   : > { %v1362_v37 = vadd.f32 %v1356_v35, %v1164_v17 }
 0xa8c   : > { %v1636_v39 = vpop.f32.mrf.mxu0 }
 0xa8d   : > { %v1369_v40 = vadd.f32 %v1537_v34, %v1362_v37 }
 0xa8e   : > { %v1359_v41 = vpop.f32.mrf.mxu0 }
 0xa8f   : > { %1370 = vst.msk [vmem:[%s310_s11] sm:$0xff] %vm337_vm0, %v1369_v40 }
 0xa90   : > { %v1637_v42 = vpop.f32.mrf.mxu0 }
 0xa91   : > { %1908 = shalt.err (!%p1905_p9)
}
 0xa92   : > { %s1909_s1 = scalar_lea.hbm %s2364_s8, 128  ;;  %s1913_s29 = scalar_lea.hbm %s2414_s6, 256 }
 0xa93   : > { %p1910_p13 = scmp.ne.s32.totalorder %s2364_s8, %s1909_s1  ;;  %p1914_p8 = scmp.lt.s32.totalorder %s2364_s8, %s2414_s6 }
 0xa94   : > { %p1915_p2 = scmp.lt.s32.totalorder %s1913_s29, %s1909_s1 }
 0xa95   : > { %p1911_p7 = pnand %p1910_p13, %p2434_p0 }
 0xa96   : > { %p1916_p11 = por %p1915_p2, %p1914_p8 }
 0xa97   : > { %p1912_p4 = pneg %p1911_p7 }
 0xa99   : > { %p1917_p12 = pnand %p1916_p11, %p1912_p4 }
 0xa9b   : > { %1920 = shalt.err (!%p1917_p12)
}
 0xa9c   : > { %1652 = dma.vmem_to_hbm [thread:$0]  (%p2434_p0), %s2366_s20, 128, %s2364_s8, %s1372_s25  }
 0xa9d PF: > { %s1397_s10 = sand.u32 1, %s1955_s21   ;;  %p2435_p5 = scmp.ne.s32.totalorder %s2421_s28, 0 }
 0xa9e   : > { %p2436_p10 = scmp.ge.s32.totalorder %s1967_s24, 2  ;;  %s1398_s11 = scalar_lea.sflag [#allocation4], %s1397_s10 }
 0xaa0   : > { %p1669_p1 = pnand %p2436_p10, %p2435_p5 }
 0xaa2   : > { %p1670_p3 = pneg %p1669_p1 }
 0xaa4   : > { %1950 = dma.done.wait (%p1670_p3), %s1398_s11, 128  }
 0xaa5   : > { %1952 = vsyncadd (%p1670_p3), %s1398_s11, 4294967168  ;;  %p21_p6 = scmp.ge.s32.totalorder %s2113_s13, 4   ;;  %s2437_s21 = smov %s1959_s22 }
 0xaa6   : > { %s2438_s22 = smov %s1963_s23  ;;  %s2439_s23 = smov %s2123_s16 }
 0xaa7   : > { %s2440_s24 = smov %s2113_s13  ;;  %23 = sbr.rel (!%p21_p6) target bundleno = 9 (0x9), region = 104 }
 0xaac   :  { %1403 = vsyncpa [#allocation3], 1 }
 0xaad   :  { %1405 = vsyncpa [#allocation3 + $0x1], 1 }
 0xaae   :  { %1406 = vsyncpa [#allocation6], 1 }
 0xaaf   :  { %1407 = vsyncpa [#allocation9], 1 }
 0xab0   :  { %1408 = vsyncpa [#allocation4], 1 }
 0xab1   :  { %1410 = vsyncpa [#allocation4 + $0x1], 1 }

</bundles_post_ra>
